<compile_context>
chip_gen: v6e
topology: v6e:2x2x1
jax: 0.10.0
libtpu: 0.0.40
codegen_flags: <defaults>
</compile_context>

<pallas_src>
import math

import jax
import jax.numpy as jnp
from jax.experimental import pallas as pl
from jax.experimental.pallas import tpu as pltpu


# --------------------------------------------------------------------------- #
# Kernel
# --------------------------------------------------------------------------- #
def _layernorm(x, gamma, beta, eps=1e-12):
    # E[x^2] - mu^2: the two reductions are independent (better XLU overlap
    # than the sequential two-pass form).
    mu = jnp.mean(x, axis=-1, keepdims=True)
    var = jnp.maximum(jnp.mean(x * x, axis=-1, keepdims=True) - mu * mu, 0.0)
    return (x - mu) * jax.lax.rsqrt(var + eps) * gamma + beta


def fused_encoder_head_kernel(x_ref, mask_ref,
                              wq_ref, wk_ref, wv_ref, wo_ref,
                              w1_ref, w2_ref, wp_ref, wc_ref,
                              dbias_ref, fbias_ref, cbias_ref,
                              logits_ref):
    """One BERT-style encoder layer + pooler + classifier for a batch tile.

    Only the CLS row is propagated past the K/V projections (the module's
    output depends only on the CLS row of the last hidden state).

    x_ref:      (Bt, S, D)  bf16 embeddings
    mask_ref:   (Bt, 1, S)  f32 attention mask (1 = keep, 0 = pad)
    w*_ref:     bf16 weight matrices (scale 1/sqrt(D) pre-folded into wq)
    dbias_ref:  (10, D) f32 stacked [bq, bk, bv, bo, ln1_g, ln1_b, b_ff2,
                                     ln2_g, ln2_b, b_pool]
    fbias_ref:  (1, F)  f32 FFN bias;   cbias_ref: (1, Cp) f32 classifier bias
    logits_ref: (Bt, Cp) f32 output (lane-dense, Cp padded to 128)
    """
    Bt, S, D = x_ref.shape

    x_raw = x_ref[...]                               # (Bt, S, D) bf16
    mask = mask_ref[...].astype(jnp.float32)         # (Bt, 1, S)

    db = dbias_ref[...]                              # (10, D) f32
    bq, bk, bv, bo = db[0:1], db[1:2], db[2:3], db[3:4]
    ln1g, ln1b = db[4:5], db[5:6]
    b2, ln2g, ln2b, bp = db[6:7], db[7:8], db[8:9], db[9:10]

    # CLS residual (f32) and flattened bf16 rows for the wide-M K/V matmuls.
    # (Reshape done on the f32 copy: layout-safe merge of the leading dims.)
    x_cls = x_raw[:, 0, :].astype(jnp.float32)                       # (Bt, D)
    x2_bf = x_raw.astype(jnp.float32).reshape(Bt * S, D).astype(jnp.bfloat16)

    # ---- K / V projections for all S tokens (needed by the CLS query) ------ #
    # TODO(synk): real BERT uses multi-head attention; single head kept since
    # the pretrained checkpoint is synthetic anyway.
    k = (jnp.dot(x2_bf, wk_ref[...], preferred_element_type=jnp.float32) + bk
         ).reshape(Bt, S, D).astype(jnp.bfloat16)
    v = (jnp.dot(x2_bf, wv_ref[...], preferred_element_type=jnp.float32) + bv
         ).reshape(Bt, S, D).astype(jnp.bfloat16)

    # ---- CLS-row attention -------------------------------------------------- #
    q_cls = (jnp.dot(x_cls.astype(jnp.bfloat16), wq_ref[...],
                     preferred_element_type=jnp.float32) + bq)       # (Bt, D)
    q3 = q_cls.astype(jnp.bfloat16)[:, None, :]                      # (Bt, 1, D)

    # scores[b, 0, j] = sum_d q[b,d] * k[b,j,d]  (scale folded into wq/bq)
    scores = jax.lax.dot_general(
        q3, k, dimension_numbers=(((2,), (2,)), ((0,), (0,))),
        preferred_element_type=jnp.float32)                          # (Bt, 1, S)

    # Additive mask.  Fully-masked rows (batch padding) give a uniform (not
    # zero) distribution; harmless, those rows are sliced off in the wrapper.
    scores = scores + (1.0 - mask) * (-1e9)

    m = jnp.max(scores, axis=-1, keepdims=True)
    e = jnp.exp(scores - m)
    p = (e * pl.reciprocal(jnp.sum(e, axis=-1, keepdims=True), approx=True)
         ).astype(jnp.bfloat16)                                      # (Bt, 1, S)

    ctx = jax.lax.dot_general(
        p, v, dimension_numbers=(((2,), (1,)), ((0,), (0,))),
        preferred_element_type=jnp.float32)[:, 0, :]                 # (Bt, D)

    attn = jnp.dot(ctx.astype(jnp.bfloat16), wo_ref[...],
                   preferred_element_type=jnp.float32) + bo
    h = _layernorm(x_cls + attn, ln1g, ln1b)                         # (Bt, D)

    # ---- feed-forward (CLS row only) ---------------------------------------- #
    ff = jnp.dot(h.astype(jnp.bfloat16), w1_ref[...],
                 preferred_element_type=jnp.float32) + fbias_ref[...]
    # TODO(synk): HF BERT default GELU is the exact erf form; tanh approximation
    # kept here (small numeric drift, identical structure).
    ff = jax.nn.gelu(ff, approximate=True)
    ff = jnp.dot(ff.astype(jnp.bfloat16), w2_ref[...],
                 preferred_element_type=jnp.float32) + b2
    hid = _layernorm(h + ff, ln2g, ln2b)                             # (Bt, D)

    # ---- pooler + classifier (Dropout = identity at inference) -------------- #
    pooled = jnp.tanh(
        jnp.dot(hid.astype(jnp.bfloat16), wp_ref[...],
                preferred_element_type=jnp.float32) + bp)
    logits = jnp.dot(pooled.astype(jnp.bfloat16), wc_ref[...],
                     preferred_element_type=jnp.float32) + cbias_ref[...]   # (Bt, Cp)

    logits_ref[...] = logits.astype(logits_ref.dtype)


# --------------------------------------------------------------------------- #
# Wrapper
# --------------------------------------------------------------------------- #
def _vmem_limit_bytes():
    """Per-generation scoped-VMEM budget (~3/4 of physical, capped at 100 MiB)."""
    cap = 64 * 1024 * 1024                      # conservative fallback (v7x-sized)
    try:
        info = pltpu.get_tpu_info()
        cap = int(getattr(info, "vmem_capacity_bytes", cap))
    except Exception:
        pass
    return min((cap * 3) // 4, 100 * 1024 * 1024)


def multilabel_classifier_forward(input_ids, attention_mask, params, num_classes,
                                  block_b=None):
    """Equivalent of MultilabelClassifier.forward for a BertModel backbone.

    block_b: batch elements per grid step.  Default: sized so block_b*S >= 128
    (fills the MXU M dimension for the K/V projections), rounded to a multiple
    of 8.  B is padded up to a multiple of block_b; padded rows are sliced off.
    """
    B, S = input_ids.shape
    D = params["tok_emb"].shape[1]
    C = num_classes
    Cp = pl.cdiv(C, 128) * 128                  # lane-dense classifier output

    if block_b is None:
        block_b = max(8, pl.cdiv(128, S))
    block_b = max(8, pl.cdiv(block_b, 8) * 8)   # sublane-friendly output tiles
    B_pad = pl.cdiv(B, block_b) * block_b

    # Embedding lookup (gather) kept in plain JAX glue; streamed to the kernel
    # as bf16 (halves the per-step input DMA), upcast in-kernel for residual/LN.
    x = (params["tok_emb"][input_ids] + params["pos_emb"][None, :S, :]
         ).astype(jnp.bfloat16)
    mask3d = attention_mask.astype(jnp.float32).reshape(B, 1, S)
    if B_pad != B:
        x = jnp.pad(x, ((0, B_pad - B), (0, 0), (0, 0)))
        mask3d = jnp.pad(mask3d, ((0, B_pad - B), (0, 0), (0, 0)))

    inv_sqrt_d = 1.0 / math.sqrt(D)             # fold attention scale into Wq / bq
    bf16 = lambda a: a.astype(jnp.bfloat16)

    wq = bf16(params["wq"] * inv_sqrt_d)
    wk = bf16(params["wk"])
    wv = bf16(params["wv"])
    wo = bf16(params["wo"])
    w1 = bf16(params["w_ff1"])
    w2 = bf16(params["w_ff2"])
    wp = bf16(params["w_pool"])
    wc = bf16(jnp.pad(params["w_cls"], ((0, 0), (0, Cp - C))))

    dbias = jnp.concatenate([
        params["bq"] * inv_sqrt_d, params["bk"], params["bv"], params["bo"],
        params["ln1_g"], params["ln1_b"], params["b_ff2"],
        params["ln2_g"], params["ln2_b"], params["b_pool"],
    ], axis=0).astype(jnp.float32)                               # (10, D)
    fbias = params["b_ff1"].astype(jnp.float32)                  # (1, F)
    cbias = jnp.pad(params["b_cls"], ((0, 0), (0, Cp - C))).astype(jnp.float32)  # (1, Cp)

    weights = [wq, wk, wv, wo, w1, w2, wp, wc, dbias, fbias, cbias]

    def const_spec(arr):
        # Grid-invariant: single-buffered (DMA'd once), saves half the weight VMEM.
        zeros = (0,) * arr.ndim
        return pl.BlockSpec(arr.shape, lambda b: zeros,
                            pipeline_mode=pl.Buffered(1))

    in_specs = [
        pl.BlockSpec((block_b, S, D), lambda b: (b, 0, 0)),
        pl.BlockSpec((block_b, 1, S), lambda b: (b, 0, 0)),
    ] + [const_spec(w) for w in weights]

    logits = pl.pallas_call(
        fused_encoder_head_kernel,
        out_shape=jax.ShapeDtypeStruct((B_pad, Cp), jnp.float32),
        grid=(B_pad // block_b,),
        in_specs=in_specs,
        out_specs=pl.BlockSpec((block_b, Cp), lambda b: (b, 0)),
        compiler_params=pltpu.CompilerParams(
            dimension_semantics=("parallel",),
            vmem_limit_bytes=_vmem_limit_bytes(),
        ),
    )(x, mask3d, *weights)

    return logits[:B, :C]                        # (B, C) f32


# --------------------------------------------------------------------------- #
# Deterministic parameter init + demo
# --------------------------------------------------------------------------- #
def init_params(key, vocab, seq, d_model, d_ff, num_classes):
    ks = jax.random.split(key, 12)
    n = lambda k, shape: (0.02 * jax.random.normal(k, shape)).astype(jnp.float32)
    return {
        "tok_emb": n(ks[0], (vocab, d_model)),
        "pos_emb": n(ks[1], (seq, d_model)),
        "wq": n(ks[2], (d_model, d_model)), "bq": jnp.zeros((1, d_model), jnp.float32),
        "wk": n(ks[3], (d_model, d_model)), "bk": jnp.zeros((1, d_model), jnp.float32),
        "wv": n(ks[4], (d_model, d_model)), "bv": jnp.zeros((1, d_model), jnp.float32),
        "wo": n(ks[5], (d_model, d_model)), "bo": jnp.zeros((1, d_model), jnp.float32),
        "ln1_g": jnp.ones((1, d_model), jnp.float32),
        "ln1_b": jnp.zeros((1, d_model), jnp.float32),
        "w_ff1": n(ks[6], (d_model, d_ff)), "b_ff1": jnp.zeros((1, d_ff), jnp.float32),
        "w_ff2": n(ks[7], (d_ff, d_model)), "b_ff2": jnp.zeros((1, d_model), jnp.float32),
        "ln2_g": jnp.ones((1, d_model), jnp.float32),
        "ln2_b": jnp.zeros((1, d_model), jnp.float32),
        "w_pool": n(ks[8], (d_model, d_model)),
        "b_pool": jnp.zeros((1, d_model), jnp.float32),
        "w_cls": n(ks[9], (d_model, num_classes)),
        "b_cls": jnp.zeros((1, num_classes), jnp.float32),
    }


if __name__ == "__main__":
    B, S, D, F, C, V = 2, 8, 32, 128, 8, 100

    key = jax.random.PRNGKey(0)
    k_par, k_ids = jax.random.split(key)
    params = init_params(k_par, V, S, D, F, C)

    input_ids = jax.random.randint(k_ids, (B, S), 0, V, dtype=jnp.int32)
    attention_mask = jnp.ones((B, S), jnp.int32).at[1, 6:].set(0)  # ragged batch

    logits = multilabel_classifier_forward(input_ids, attention_mask, params, C)
    logits = jax.block_until_ready(logits)

    assert logits.shape == (B, C) and logits.dtype == jnp.float32
    assert bool(jnp.all(jnp.isfinite(logits)))
    print("KERNEL_OK")
</pallas_src>

<mosaic_0001>
module attributes {stable_mosaic.version = 11 : i64} {
  func.func @fused_encoder_head_kernel(%arg0: i32, %arg1: memref<16x8x32xbf16, #tpu.memory_space<vmem>>, %arg2: memref<16x1x8xf32, #tpu.memory_space<vmem>>, %arg3: memref<32x32xbf16, #tpu.memory_space<vmem>>, %arg4: memref<32x32xbf16, #tpu.memory_space<vmem>>, %arg5: memref<32x32xbf16, #tpu.memory_space<vmem>>, %arg6: memref<32x32xbf16, #tpu.memory_space<vmem>>, %arg7: memref<32x128xbf16, #tpu.memory_space<vmem>>, %arg8: memref<128x32xbf16, #tpu.memory_space<vmem>>, %arg9: memref<32x32xbf16, #tpu.memory_space<vmem>>, %arg10: memref<32x128xbf16, #tpu.memory_space<vmem>>, %arg11: memref<10x32xf32, #tpu.memory_space<vmem>>, %arg12: memref<1x128xf32, #tpu.memory_space<vmem>>, %arg13: memref<1x128xf32, #tpu.memory_space<vmem>>, %arg14: memref<16x128xf32, #tpu.memory_space<vmem>>) attributes {dimension_semantics = [#tpu.dimension_semantics<parallel>], iteration_bounds = array<i64: 1>, scalar_prefetch = 0 : i64, scratch_operands = 0 : i64, tpu.core_type = #tpu.core_type<tc>, window_params = [{transform_indices = @transform_0, window_bounds = array<i64: 16, 8, 32>}, {transform_indices = @transform_1, window_bounds = array<i64: 16, 1, 8>}, {pipeline_mode = #tpu.pipeline_mode<synchronous>, transform_indices = @transform_2, window_bounds = array<i64: 32, 32>}, {pipeline_mode = #tpu.pipeline_mode<synchronous>, transform_indices = @transform_3, window_bounds = array<i64: 32, 32>}, {pipeline_mode = #tpu.pipeline_mode<synchronous>, transform_indices = @transform_4, window_bounds = array<i64: 32, 32>}, {pipeline_mode = #tpu.pipeline_mode<synchronous>, transform_indices = @transform_5, window_bounds = array<i64: 32, 32>}, {pipeline_mode = #tpu.pipeline_mode<synchronous>, transform_indices = @transform_6, window_bounds = array<i64: 32, 128>}, {pipeline_mode = #tpu.pipeline_mode<synchronous>, transform_indices = @transform_7, window_bounds = array<i64: 128, 32>}, {pipeline_mode = #tpu.pipeline_mode<synchronous>, transform_indices = @transform_8, window_bounds = array<i64: 32, 32>}, {pipeline_mode = #tpu.pipeline_mode<synchronous>, transform_indices = @transform_9, window_bounds = array<i64: 32, 128>}, {pipeline_mode = #tpu.pipeline_mode<synchronous>, transform_indices = @transform_10, window_bounds = array<i64: 10, 32>}, {pipeline_mode = #tpu.pipeline_mode<synchronous>, transform_indices = @transform_11, window_bounds = array<i64: 1, 128>}, {pipeline_mode = #tpu.pipeline_mode<synchronous>, transform_indices = @transform_12, window_bounds = array<i64: 1, 128>}, {transform_indices = @transform_13, window_bounds = array<i64: 16, 128>}]} {
    %c0 = arith.constant 0 : index
    %c0_0 = arith.constant 0 : index
    %c0_1 = arith.constant 0 : index
    %0 = vector.load %arg1[%c0, %c0_0, %c0_1] : memref<16x8x32xbf16, #tpu.memory_space<vmem>>, vector<16x8x32xbf16>
    %c0_2 = arith.constant 0 : index
    %c0_3 = arith.constant 0 : index
    %c0_4 = arith.constant 0 : index
    %1 = vector.load %arg2[%c0_2, %c0_3, %c0_4] : memref<16x1x8xf32, #tpu.memory_space<vmem>>, vector<16x1x8xf32>
    %c0_5 = arith.constant 0 : index
    %c0_6 = arith.constant 0 : index
    %2 = vector.load %arg11[%c0_5, %c0_6] : memref<10x32xf32, #tpu.memory_space<vmem>>, vector<10x32xf32>
    %3 = vector.extract_strided_slice %2 {offsets = [0, 0], sizes = [1, 32], strides = [1, 1]} : vector<10x32xf32> to vector<1x32xf32>
    %4 = vector.extract_strided_slice %2 {offsets = [1, 0], sizes = [1, 32], strides = [1, 1]} : vector<10x32xf32> to vector<1x32xf32>
    %5 = vector.extract_strided_slice %2 {offsets = [2, 0], sizes = [1, 32], strides = [1, 1]} : vector<10x32xf32> to vector<1x32xf32>
    %6 = vector.extract_strided_slice %2 {offsets = [3, 0], sizes = [1, 32], strides = [1, 1]} : vector<10x32xf32> to vector<1x32xf32>
    %7 = vector.extract_strided_slice %2 {offsets = [4, 0], sizes = [1, 32], strides = [1, 1]} : vector<10x32xf32> to vector<1x32xf32>
    %8 = vector.extract_strided_slice %2 {offsets = [5, 0], sizes = [1, 32], strides = [1, 1]} : vector<10x32xf32> to vector<1x32xf32>
    %9 = vector.extract_strided_slice %2 {offsets = [6, 0], sizes = [1, 32], strides = [1, 1]} : vector<10x32xf32> to vector<1x32xf32>
    %10 = vector.extract_strided_slice %2 {offsets = [7, 0], sizes = [1, 32], strides = [1, 1]} : vector<10x32xf32> to vector<1x32xf32>
    %11 = vector.extract_strided_slice %2 {offsets = [8, 0], sizes = [1, 32], strides = [1, 1]} : vector<10x32xf32> to vector<1x32xf32>
    %12 = vector.extract_strided_slice %2 {offsets = [9, 0], sizes = [1, 32], strides = [1, 1]} : vector<10x32xf32> to vector<1x32xf32>
    %13 = vector.extract_strided_slice %0 {offsets = [0, 0, 0], sizes = [16, 1, 32], strides = [1, 1, 1]} : vector<16x8x32xbf16> to vector<16x1x32xbf16>
    %14 = vector.shape_cast %13 : vector<16x1x32xbf16> to vector<16x32xbf16>
    %15 = arith.extf %14 : vector<16x32xbf16> to vector<16x32xf32>
    %16 = arith.extf %0 : vector<16x8x32xbf16> to vector<16x8x32xf32>
    %17 = vector.shape_cast %16 : vector<16x8x32xf32> to vector<128x32xf32>
    %18 = arith.truncf %17 : vector<128x32xf32> to vector<128x32xbf16>
    %c0_7 = arith.constant 0 : index
    %c0_8 = arith.constant 0 : index
    %19 = vector.load %arg4[%c0_7, %c0_8] : memref<32x32xbf16, #tpu.memory_space<vmem>>, vector<32x32xbf16>
    %cst = arith.constant dense<0.000000e+00> : vector<128x32xf32>
    %20 = tpu.matmul %18, %19, %cst {dimension_numbers = #tpu.dot_dimension_numbers<[1], [0], [0], [1], [0, 0, 1, 1], [], []>} : vector<128x32xbf16>, vector<32x32xbf16>, vector<128x32xf32> -> vector<128x32xf32>
    %21 = vector.broadcast %4 : vector<1x32xf32> to vector<128x32xf32>
    %22 = arith.addf %20, %21 : vector<128x32xf32>
    %23 = vector.shape_cast %22 : vector<128x32xf32> to vector<16x8x32xf32>
    %24 = arith.truncf %23 : vector<16x8x32xf32> to vector<16x8x32xbf16>
    %c0_9 = arith.constant 0 : index
    %c0_10 = arith.constant 0 : index
    %25 = vector.load %arg5[%c0_9, %c0_10] : memref<32x32xbf16, #tpu.memory_space<vmem>>, vector<32x32xbf16>
    %cst_11 = arith.constant dense<0.000000e+00> : vector<128x32xf32>
    %26 = tpu.matmul %18, %25, %cst_11 {dimension_numbers = #tpu.dot_dimension_numbers<[1], [0], [0], [1], [0, 0, 1, 1], [], []>} : vector<128x32xbf16>, vector<32x32xbf16>, vector<128x32xf32> -> vector<128x32xf32>
    %27 = vector.broadcast %5 : vector<1x32xf32> to vector<128x32xf32>
    %28 = arith.addf %26, %27 : vector<128x32xf32>
    %29 = vector.shape_cast %28 : vector<128x32xf32> to vector<16x8x32xf32>
    %30 = arith.truncf %29 : vector<16x8x32xf32> to vector<16x8x32xbf16>
    %31 = arith.truncf %15 : vector<16x32xf32> to vector<16x32xbf16>
    %c0_12 = arith.constant 0 : index
    %c0_13 = arith.constant 0 : index
    %32 = vector.load %arg3[%c0_12, %c0_13] : memref<32x32xbf16, #tpu.memory_space<vmem>>, vector<32x32xbf16>
    %cst_14 = arith.constant dense<0.000000e+00> : vector<16x32xf32>
    %33 = tpu.matmul %31, %32, %cst_14 {dimension_numbers = #tpu.dot_dimension_numbers<[1], [0], [0], [1], [0, 0, 1, 1], [], []>} : vector<16x32xbf16>, vector<32x32xbf16>, vector<16x32xf32> -> vector<16x32xf32>
    %34 = vector.broadcast %3 : vector<1x32xf32> to vector<16x32xf32>
    %35 = arith.addf %33, %34 : vector<16x32xf32>
    %36 = arith.truncf %35 : vector<16x32xf32> to vector<16x32xbf16>
    %37 = vector.shape_cast %36 : vector<16x32xbf16> to vector<16x1x32xbf16>
    %cst_15 = arith.constant dense<0.000000e+00> : vector<16x1x8xf32>
    %38 = tpu.matmul %37, %24, %cst_15 {dimension_numbers = #tpu.dot_dimension_numbers<[2], [2], [1], [1], [0, 0, 0, 1, 1, 1], [0], [0]>} : vector<16x1x32xbf16>, vector<16x8x32xbf16>, vector<16x1x8xf32> -> vector<16x1x8xf32>
    %cst_16 = arith.constant 1.000000e+00 : f32
    %39 = vector.broadcast %cst_16 : f32 to vector<16x1x8xf32>
    %40 = arith.subf %39, %1 : vector<16x1x8xf32>
    %cst_17 = arith.constant -1.000000e+09 : f32
    %41 = vector.broadcast %cst_17 : f32 to vector<16x1x8xf32>
    %42 = arith.mulf %40, %41 : vector<16x1x8xf32>
    %43 = arith.addf %38, %42 : vector<16x1x8xf32>
    %cst_18 = arith.constant dense<0xFF800000> : vector<16x1xf32>
    %44 = vector.multi_reduction <maximumf>, %43, %cst_18 [2] : vector<16x1x8xf32> to vector<16x1xf32>
    %45 = vector.shape_cast %44 : vector<16x1xf32> to vector<16x1x1xf32>
    %46 = vector.broadcast %45 : vector<16x1x1xf32> to vector<16x1x8xf32>
    %47 = arith.subf %43, %46 : vector<16x1x8xf32>
    %48 = math.exp %47 : vector<16x1x8xf32>
    %cst_19 = arith.constant dense<0.000000e+00> : vector<16x1xf32>
    %49 = vector.multi_reduction <add>, %48, %cst_19 [2] : vector<16x1x8xf32> to vector<16x1xf32>
    %50 = vector.shape_cast %49 : vector<16x1xf32> to vector<16x1x1xf32>
    %51 = tpu.reciprocal %50 {approx = true} : vector<16x1x1xf32> -> vector<16x1x1xf32>
    %52 = vector.broadcast %51 : vector<16x1x1xf32> to vector<16x1x8xf32>
    %53 = arith.mulf %48, %52 : vector<16x1x8xf32>
    %54 = arith.truncf %53 : vector<16x1x8xf32> to vector<16x1x8xbf16>
    %cst_20 = arith.constant dense<0.000000e+00> : vector<16x1x32xf32>
    %55 = tpu.matmul %54, %30, %cst_20 {dimension_numbers = #tpu.dot_dimension_numbers<[2], [1], [1], [2], [0, 0, 0, 1, 1, 2], [0], [0]>} : vector<16x1x8xbf16>, vector<16x8x32xbf16>, vector<16x1x32xf32> -> vector<16x1x32xf32>
    %56 = vector.shape_cast %55 : vector<16x1x32xf32> to vector<16x32xf32>
    %57 = arith.truncf %56 : vector<16x32xf32> to vector<16x32xbf16>
    %c0_21 = arith.constant 0 : index
    %c0_22 = arith.constant 0 : index
    %58 = vector.load %arg6[%c0_21, %c0_22] : memref<32x32xbf16, #tpu.memory_space<vmem>>, vector<32x32xbf16>
    %cst_23 = arith.constant dense<0.000000e+00> : vector<16x32xf32>
    %59 = tpu.matmul %57, %58, %cst_23 {dimension_numbers = #tpu.dot_dimension_numbers<[1], [0], [0], [1], [0, 0, 1, 1], [], []>} : vector<16x32xbf16>, vector<32x32xbf16>, vector<16x32xf32> -> vector<16x32xf32>
    %60 = vector.broadcast %6 : vector<1x32xf32> to vector<16x32xf32>
    %61 = arith.addf %59, %60 : vector<16x32xf32>
    %62 = arith.addf %15, %61 : vector<16x32xf32>
    %cst_24 = arith.constant dense<0.000000e+00> : vector<16xf32>
    %63 = vector.multi_reduction <add>, %62, %cst_24 [1] : vector<16x32xf32> to vector<16xf32>
    %64 = vector.shape_cast %63 : vector<16xf32> to vector<16x1xf32>
    %cst_25 = arith.constant 3.200000e+01 : f32
    %65 = vector.broadcast %cst_25 : f32 to vector<16x1xf32>
    %66 = arith.divf %64, %65 : vector<16x1xf32>
    %67 = arith.mulf %62, %62 : vector<16x32xf32>
    %cst_26 = arith.constant dense<0.000000e+00> : vector<16xf32>
    %68 = vector.multi_reduction <add>, %67, %cst_26 [1] : vector<16x32xf32> to vector<16xf32>
    %69 = vector.shape_cast %68 : vector<16xf32> to vector<16x1xf32>
    %cst_27 = arith.constant 3.200000e+01 : f32
    %70 = vector.broadcast %cst_27 : f32 to vector<16x1xf32>
    %71 = arith.divf %69, %70 : vector<16x1xf32>
    %72 = arith.mulf %66, %66 : vector<16x1xf32>
    %73 = arith.subf %71, %72 : vector<16x1xf32>
    %cst_28 = arith.constant 0.000000e+00 : f32
    %74 = vector.broadcast %cst_28 : f32 to vector<16x1xf32>
    %75 = arith.maximumf %73, %74 : vector<16x1xf32>
    %76 = vector.broadcast %66 : vector<16x1xf32> to vector<16x32xf32>
    %77 = arith.subf %62, %76 : vector<16x32xf32>
    %cst_29 = arith.constant 9.99999996E-13 : f32
    %78 = vector.broadcast %cst_29 : f32 to vector<16x1xf32>
    %79 = arith.addf %75, %78 : vector<16x1xf32>
    %80 = math.rsqrt %79 : vector<16x1xf32>
    %81 = vector.broadcast %80 : vector<16x1xf32> to vector<16x32xf32>
    %82 = arith.mulf %77, %81 : vector<16x32xf32>
    %83 = vector.broadcast %7 : vector<1x32xf32> to vector<16x32xf32>
    %84 = arith.mulf %82, %83 : vector<16x32xf32>
    %85 = vector.broadcast %8 : vector<1x32xf32> to vector<16x32xf32>
    %86 = arith.addf %84, %85 : vector<16x32xf32>
    %87 = arith.truncf %86 : vector<16x32xf32> to vector<16x32xbf16>
    %c0_30 = arith.constant 0 : index
    %c0_31 = arith.constant 0 : index
    %88 = vector.load %arg7[%c0_30, %c0_31] : memref<32x128xbf16, #tpu.memory_space<vmem>>, vector<32x128xbf16>
    %cst_32 = arith.constant dense<0.000000e+00> : vector<16x128xf32>
    %89 = tpu.matmul %87, %88, %cst_32 {dimension_numbers = #tpu.dot_dimension_numbers<[1], [0], [0], [1], [0, 0, 1, 1], [], []>} : vector<16x32xbf16>, vector<32x128xbf16>, vector<16x128xf32> -> vector<16x128xf32>
    %c0_33 = arith.constant 0 : index
    %c0_34 = arith.constant 0 : index
    %90 = vector.load %arg12[%c0_33, %c0_34] : memref<1x128xf32, #tpu.memory_space<vmem>>, vector<1x128xf32>
    %91 = vector.broadcast %90 : vector<1x128xf32> to vector<16x128xf32>
    %92 = arith.addf %89, %91 : vector<16x128xf32>
    %93 = arith.mulf %92, %92 : vector<16x128xf32>
    %94 = arith.mulf %92, %93 : vector<16x128xf32>
    %cst_35 = arith.constant 4.471500e-02 : f32
    %95 = vector.broadcast %cst_35 : f32 to vector<16x128xf32>
    %96 = arith.mulf %95, %94 : vector<16x128xf32>
    %97 = arith.addf %92, %96 : vector<16x128xf32>
    %cst_36 = arith.constant 0.797884583 : f32
    %98 = vector.broadcast %cst_36 : f32 to vector<16x128xf32>
    %99 = arith.mulf %98, %97 : vector<16x128xf32>
    %100 = math.tanh %99 : vector<16x128xf32>
    %cst_37 = arith.constant 1.000000e+00 : f32
    %101 = vector.broadcast %cst_37 : f32 to vector<16x128xf32>
    %102 = arith.addf %101, %100 : vector<16x128xf32>
    %cst_38 = arith.constant 5.000000e-01 : f32
    %103 = vector.broadcast %cst_38 : f32 to vector<16x128xf32>
    %104 = arith.mulf %103, %102 : vector<16x128xf32>
    %105 = arith.mulf %92, %104 : vector<16x128xf32>
    %106 = arith.truncf %105 : vector<16x128xf32> to vector<16x128xbf16>
    %c0_39 = arith.constant 0 : index
    %c0_40 = arith.constant 0 : index
    %107 = vector.load %arg8[%c0_39, %c0_40] : memref<128x32xbf16, #tpu.memory_space<vmem>>, vector<128x32xbf16>
    %cst_41 = arith.constant dense<0.000000e+00> : vector<16x32xf32>
    %108 = tpu.matmul %106, %107, %cst_41 {dimension_numbers = #tpu.dot_dimension_numbers<[1], [0], [0], [1], [0, 0, 1, 1], [], []>} : vector<16x128xbf16>, vector<128x32xbf16>, vector<16x32xf32> -> vector<16x32xf32>
    %109 = vector.broadcast %9 : vector<1x32xf32> to vector<16x32xf32>
    %110 = arith.addf %108, %109 : vector<16x32xf32>
    %111 = arith.addf %86, %110 : vector<16x32xf32>
    %cst_42 = arith.constant dense<0.000000e+00> : vector<16xf32>
    %112 = vector.multi_reduction <add>, %111, %cst_42 [1] : vector<16x32xf32> to vector<16xf32>
    %113 = vector.shape_cast %112 : vector<16xf32> to vector<16x1xf32>
    %cst_43 = arith.constant 3.200000e+01 : f32
    %114 = vector.broadcast %cst_43 : f32 to vector<16x1xf32>
    %115 = arith.divf %113, %114 : vector<16x1xf32>
    %116 = arith.mulf %111, %111 : vector<16x32xf32>
    %cst_44 = arith.constant dense<0.000000e+00> : vector<16xf32>
    %117 = vector.multi_reduction <add>, %116, %cst_44 [1] : vector<16x32xf32> to vector<16xf32>
    %118 = vector.shape_cast %117 : vector<16xf32> to vector<16x1xf32>
    %cst_45 = arith.constant 3.200000e+01 : f32
    %119 = vector.broadcast %cst_45 : f32 to vector<16x1xf32>
    %120 = arith.divf %118, %119 : vector<16x1xf32>
    %121 = arith.mulf %115, %115 : vector<16x1xf32>
    %122 = arith.subf %120, %121 : vector<16x1xf32>
    %cst_46 = arith.constant 0.000000e+00 : f32
    %123 = vector.broadcast %cst_46 : f32 to vector<16x1xf32>
    %124 = arith.maximumf %122, %123 : vector<16x1xf32>
    %125 = vector.broadcast %115 : vector<16x1xf32> to vector<16x32xf32>
    %126 = arith.subf %111, %125 : vector<16x32xf32>
    %cst_47 = arith.constant 9.99999996E-13 : f32
    %127 = vector.broadcast %cst_47 : f32 to vector<16x1xf32>
    %128 = arith.addf %124, %127 : vector<16x1xf32>
    %129 = math.rsqrt %128 : vector<16x1xf32>
    %130 = vector.broadcast %129 : vector<16x1xf32> to vector<16x32xf32>
    %131 = arith.mulf %126, %130 : vector<16x32xf32>
    %132 = vector.broadcast %10 : vector<1x32xf32> to vector<16x32xf32>
    %133 = arith.mulf %131, %132 : vector<16x32xf32>
    %134 = vector.broadcast %11 : vector<1x32xf32> to vector<16x32xf32>
    %135 = arith.addf %133, %134 : vector<16x32xf32>
    %136 = arith.truncf %135 : vector<16x32xf32> to vector<16x32xbf16>
    %c0_48 = arith.constant 0 : index
    %c0_49 = arith.constant 0 : index
    %137 = vector.load %arg9[%c0_48, %c0_49] : memref<32x32xbf16, #tpu.memory_space<vmem>>, vector<32x32xbf16>
    %cst_50 = arith.constant dense<0.000000e+00> : vector<16x32xf32>
    %138 = tpu.matmul %136, %137, %cst_50 {dimension_numbers = #tpu.dot_dimension_numbers<[1], [0], [0], [1], [0, 0, 1, 1], [], []>} : vector<16x32xbf16>, vector<32x32xbf16>, vector<16x32xf32> -> vector<16x32xf32>
    %139 = vector.broadcast %12 : vector<1x32xf32> to vector<16x32xf32>
    %140 = arith.addf %138, %139 : vector<16x32xf32>
    %141 = math.tanh %140 : vector<16x32xf32>
    %142 = arith.truncf %141 : vector<16x32xf32> to vector<16x32xbf16>
    %c0_51 = arith.constant 0 : index
    %c0_52 = arith.constant 0 : index
    %143 = vector.load %arg10[%c0_51, %c0_52] : memref<32x128xbf16, #tpu.memory_space<vmem>>, vector<32x128xbf16>
    %cst_53 = arith.constant dense<0.000000e+00> : vector<16x128xf32>
    %144 = tpu.matmul %142, %143, %cst_53 {dimension_numbers = #tpu.dot_dimension_numbers<[1], [0], [0], [1], [0, 0, 1, 1], [], []>} : vector<16x32xbf16>, vector<32x128xbf16>, vector<16x128xf32> -> vector<16x128xf32>
    %c0_54 = arith.constant 0 : index
    %c0_55 = arith.constant 0 : index
    %145 = vector.load %arg13[%c0_54, %c0_55] : memref<1x128xf32, #tpu.memory_space<vmem>>, vector<1x128xf32>
    %146 = vector.broadcast %145 : vector<1x128xf32> to vector<16x128xf32>
    %147 = arith.addf %144, %146 : vector<16x128xf32>
    %c0_56 = arith.constant 0 : index
    %c0_57 = arith.constant 0 : index
    %148 = vector.load %arg14[%c0_56, %c0_57] : memref<16x128xf32, #tpu.memory_space<vmem>>, vector<16x128xf32>
    tpu.vector_store %arg14[%c0_56, %c0_57], %147 {strides = array<i32>} : memref<16x128xf32, #tpu.memory_space<vmem>>, vector<16x128xf32>,
    return
  }
  func.func @transform_0(%arg0: i32) -> (i32, i32, i32) {
    %c0_i32 = arith.constant 0 : i32
    %c0_i32_0 = arith.constant 0 : i32
    %c0_i32_1 = arith.constant 0 : i32
    return %arg0, %c0_i32, %c0_i32_0 : i32, i32, i32
  }
  func.func @transform_1(%arg0: i32) -> (i32, i32, i32) {
    %c0_i32 = arith.constant 0 : i32
    %c0_i32_0 = arith.constant 0 : i32
    %c0_i32_1 = arith.constant 0 : i32
    return %arg0, %c0_i32, %c0_i32_0 : i32, i32, i32
  }
  func.func @transform_2(%arg0: i32) -> (i32, i32) {
    %c0_i32 = arith.constant 0 : i32
    %c0_i32_0 = arith.constant 0 : i32
    %c0_i32_1 = arith.constant 0 : i32
    return %c0_i32, %c0_i32_0 : i32, i32
  }
  func.func @transform_3(%arg0: i32) -> (i32, i32) {
    %c0_i32 = arith.constant 0 : i32
    %c0_i32_0 = arith.constant 0 : i32
    %c0_i32_1 = arith.constant 0 : i32
    return %c0_i32, %c0_i32_0 : i32, i32
  }
  func.func @transform_4(%arg0: i32) -> (i32, i32) {
    %c0_i32 = arith.constant 0 : i32
    %c0_i32_0 = arith.constant 0 : i32
    %c0_i32_1 = arith.constant 0 : i32
    return %c0_i32, %c0_i32_0 : i32, i32
  }
  func.func @transform_5(%arg0: i32) -> (i32, i32) {
    %c0_i32 = arith.constant 0 : i32
    %c0_i32_0 = arith.constant 0 : i32
    %c0_i32_1 = arith.constant 0 : i32
    return %c0_i32, %c0_i32_0 : i32, i32
  }
  func.func @transform_6(%arg0: i32) -> (i32, i32) {
    %c0_i32 = arith.constant 0 : i32
    %c0_i32_0 = arith.constant 0 : i32
    %c0_i32_1 = arith.constant 0 : i32
    return %c0_i32, %c0_i32_0 : i32, i32
  }
  func.func @transform_7(%arg0: i32) -> (i32, i32) {
    %c0_i32 = arith.constant 0 : i32
    %c0_i32_0 = arith.constant 0 : i32
    %c0_i32_1 = arith.constant 0 : i32
    return %c0_i32, %c0_i32_0 : i32, i32
  }
  func.func @transform_8(%arg0: i32) -> (i32, i32) {
    %c0_i32 = arith.constant 0 : i32
    %c0_i32_0 = arith.constant 0 : i32
    %c0_i32_1 = arith.constant 0 : i32
    return %c0_i32, %c0_i32_0 : i32, i32
  }
  func.func @transform_9(%arg0: i32) -> (i32, i32) {
    %c0_i32 = arith.constant 0 : i32
    %c0_i32_0 = arith.constant 0 : i32
    %c0_i32_1 = arith.constant 0 : i32
    return %c0_i32, %c0_i32_0 : i32, i32
  }
  func.func @transform_10(%arg0: i32) -> (i32, i32) {
    %c0_i32 = arith.constant 0 : i32
    %c0_i32_0 = arith.constant 0 : i32
    %c0_i32_1 = arith.constant 0 : i32
    return %c0_i32, %c0_i32_0 : i32, i32
  }
  func.func @transform_11(%arg0: i32) -> (i32, i32) {
    %c0_i32 = arith.constant 0 : i32
    %c0_i32_0 = arith.constant 0 : i32
    %c0_i32_1 = arith.constant 0 : i32
    return %c0_i32, %c0_i32_0 : i32, i32
  }
  func.func @transform_12(%arg0: i32) -> (i32, i32) {
    %c0_i32 = arith.constant 0 : i32
    %c0_i32_0 = arith.constant 0 : i32
    %c0_i32_1 = arith.constant 0 : i32
    return %c0_i32, %c0_i32_0 : i32, i32
  }
  func.func @transform_13(%arg0: i32) -> (i32, i32) {
    %c0_i32 = arith.constant 0 : i32
    %c0_i32_0 = arith.constant 0 : i32
    return %arg0, %c0_i32 : i32, i32
  }
}

</mosaic_0001>

<bundles_post_ra>
// kernel: tpu_custom_call.1
= control target key start
LH: loop header
LB: loop body
LE: loop exit
PB: predicated region body
PF: predicated region fallthrough
CT: control target
= control target key end

     0   :  { %18 = vsyncpa [#allocation3], 0  ;;  %s6010_s0 = inlined_call_operand.vmem [shape: bf16[16,8,32], index: 0, kind: input, shape index: {}]   ;;  %s6011_s1 = inlined_call_operand.vmem [shape: f32[16,1,8], index: 1, kind: input, shape index: {}]   ;;  %s6012_s2 = inlined_call_operand.vmem [shape: bf16[32,32], index: 2, kind: input, shape index: {}]   ;;  %s6013_s3 = inlined_call_operand.hbm [shape: bf16[32,32], index: 3, kind: input, shape index: {}]   ;;  %s6014_s4 = inlined_call_operand.hbm [shape: bf16[32,32], index: 4, kind: input, shape index: {}]   ;;  %s6015_s5 = inlined_call_operand.vmem [shape: bf16[32,32], index: 5, kind: input, shape index: {}]   ;;  %s6016_s6 = inlined_call_operand.hbm [shape: bf16[32,128], index: 6, kind: input, shape index: {}]   ;;  %s6017_s7 = inlined_call_operand.vmem [shape: bf16[128,32], index: 7, kind: input, shape index: {}]   ;;  %s6018_s8 = inlined_call_operand.hbm [shape: bf16[32,32], index: 8, kind: input, shape index: {}]   ;;  %s6019_s9 = inlined_call_operand.hbm [shape: bf16[32,128], index: 9, kind: input, shape index: {}]   ;;  %s6020_s10 = inlined_call_operand.hbm [shape: f32[10,32], index: 10, kind: input, shape index: {}]   ;;  %s6021_s11 = inlined_call_operand.vmem [shape: f32[1,128], index: 11, kind: input, shape index: {}]   ;;  %s6022_s12 = inlined_call_operand.vmem [shape: f32[1,128], index: 12, kind: input, shape index: {}]   ;;  %s6023_s13 = inlined_call_operand.hbm [shape: f32[16,128], index: 13, kind: output, shape index: {}]  }
   0x1   :  { %19 = vsyncpa [#allocation6], 0 }
   0x2   :  { %20 = vsyncpa [#allocation9], 0 }
   0x3   :  { %21 = vsyncpa [#allocation12], 0 }
   0x4   :  { %22 = vsyncpa [#allocation4], 0  ;;  %s4588_s25 = smov [#allocation5]   ;;  %s4589_s27 = smov [#allocation8]  }
   0x5   :  { %s46_s26 = sshll.u32 %s4588_s25, 4  ;;  %s74_s28 = sshll.u32 %s4589_s27, 4  ;;  %s47_s26 = int_to_ptr.vmem [resolvable:$true] %s46_s26  ;;  %s75_s28 = int_to_ptr.vmem [resolvable:$true] %s74_s28 }
   0x6   :  { %s4446_s29 = scalar_lea.vmem %s47_s26, 256  ;;  %p4451_p1 = scmp.lt.s32.totalorder %s47_s26, %s47_s26 }
   0x7   :  { %p4447_p0 = scmp.ne.s32.totalorder %s47_s26, %s4446_s29  ;;  %p4452_p2 = scmp.lt.s32.totalorder %s4446_s29, %s4446_s29 }
   0x9   :  { %p4453_p3 = por %p4452_p2, %p4451_p1 }
   0xb   :  { %p4454_p4 = pnand %p4453_p3, %p4447_p0 }
   0xd   :  { %4457 = shalt.err (!%p4454_p4)
}
   0xe   :  { %s4590_s30 = smov 64   ;;  %s4591_s14 = smov 4  }
   0xf   :  { %52 = dma.hbm_to_vmem [thread:$0]  %s6014_s4, 256, %s47_s26, [#allocation6], %s4590_s30, %s4590_s30, %s4591_s14  }
  0x10   :  { %s4466_s17 = scalar_lea.vmem %s75_s28, 256  ;;  %p4471_p6 = scmp.lt.s32.totalorder %s75_s28, %s75_s28 }
  0x11   :  { %p4467_p5 = scmp.ne.s32.totalorder %s75_s28, %s4466_s17  ;;  %p4472_p7 = scmp.lt.s32.totalorder %s4466_s17, %s4466_s17 }
  0x13   :  { %p4473_p8 = por %p4472_p7, %p4471_p6 }
  0x15   :  { %p4474_p9 = pnand %p4473_p8, %p4467_p5 }
  0x17   :  { %4477 = shalt.err (!%p4474_p9)
}
  0x18   :  { %80 = dma.hbm_to_vmem [thread:$0]  %s6018_s8, 256, %s75_s28, [#allocation9], %s4590_s30, %s4590_s30, %s4591_s14  }
  0x19   :  { %s4592_s20 = smov [#allocation2]   ;;  %s4593_s22 = smov [#allocation7]  }
  0x1a   :  { %s34_s21 = sshll.u32 %s4592_s20, 4  ;;  %s60_s23 = sshll.u32 %s4593_s22, 4  ;;  %s35_s21 = int_to_ptr.vmem [resolvable:$true] %s34_s21  ;;  %s61_s23 = int_to_ptr.vmem [resolvable:$true] %s60_s23 }
  0x1b   :  { %s4486_s4 = scalar_lea.vmem %s35_s21, 256  ;;  %p4491_p11 = scmp.lt.s32.totalorder %s35_s21, %s35_s21 }
  0x1c   :  { %p4487_p10 = scmp.ne.s32.totalorder %s35_s21, %s4486_s4  ;;  %p4492_p12 = scmp.lt.s32.totalorder %s4486_s4, %s4486_s4 }
  0x1e   :  { %p4493_p13 = por %p4492_p12, %p4491_p11 }
  0x20   :  { %p4494_p0 = pnand %p4493_p13, %p4487_p10 }
  0x22   :  { %4497 = shalt.err (!%p4494_p0)
}
  0x23   :  { %40 = dma.hbm_to_vmem [thread:$0]  %s6013_s3, 256, %s35_s21, [#allocation3], %s4590_s30, %s4590_s30, %s4591_s14  }
  0x24   :  { %s4506_s8 = scalar_lea.vmem %s61_s23, 256  ;;  %p4511_p2 = scmp.lt.s32.totalorder %s61_s23, %s61_s23 }
  0x25   :  { %p4507_p1 = scmp.ne.s32.totalorder %s61_s23, %s4506_s8  ;;  %p4512_p3 = scmp.lt.s32.totalorder %s4506_s8, %s4506_s8 }
  0x27   :  { %p4513_p4 = por %p4512_p3, %p4511_p2 }
  0x29   :  { %p4514_p5 = pnand %p4513_p4, %p4507_p1 }
  0x2b   :  { %4517 = shalt.err (!%p4514_p5)
}
  0x2c   :  { %66 = dma.hbm_to_vmem [thread:$0]  %s6016_s6, 256, %s61_s23, [#allocation6], %s4590_s30, %s4590_s30, %s4591_s14  }
  0x2d   :  { %s4594_s28 = smov [#allocation10]   ;;  %s4595_s15 = smov [#allocation11]  }
  0x2e   :  { %s86_s29 = sshll.u32 %s4594_s28, 4  ;;  %s98_s16 = sshll.u32 %s4595_s15, 4  ;;  %s87_s29 = int_to_ptr.vmem [resolvable:$true] %s86_s29  ;;  %s99_s16 = int_to_ptr.vmem [resolvable:$true] %s98_s16 }
  0x2f   :  { %s4526_s3 = scalar_lea.vmem %s87_s29, 256  ;;  %p4531_p7 = scmp.lt.s32.totalorder %s87_s29, %s87_s29 }
  0x30   :  { %p4527_p6 = scmp.ne.s32.totalorder %s87_s29, %s4526_s3  ;;  %p4532_p8 = scmp.lt.s32.totalorder %s4526_s3, %s4526_s3 }
  0x32   :  { %p4533_p9 = por %p4532_p8, %p4531_p7 }
  0x34   :  { %p4534_p10 = pnand %p4533_p9, %p4527_p6 }
  0x36   :  { %4537 = shalt.err (!%p4534_p10)
}
  0x37   :  { %92 = dma.hbm_to_vmem [thread:$0]  %s6019_s9, 256, %s87_s29, [#allocation9], %s4590_s30, %s4590_s30, %s4591_s14  }
  0x38   :  { %s4546_s6 = scalar_lea.vmem %s99_s16, 256  ;;  %p4551_p12 = scmp.lt.s32.totalorder %s99_s16, %s99_s16 }
  0x39   :  { %p4547_p11 = scmp.ne.s32.totalorder %s99_s16, %s4546_s6  ;;  %p4552_p13 = scmp.lt.s32.totalorder %s4546_s6, %s4546_s6 }
  0x3b   :  { %p4553_p0 = por %p4552_p13, %p4551_p12 }
  0x3d   :  { %p4554_p1 = pnand %p4553_p0, %p4547_p11 }
  0x3f   :  { %4557 = shalt.err (!%p4554_p1)
}
  0x40   :  { %s4596_s19 = smov 128   ;;  %s4597_s20 = smov 8  }
  0x41   :  { %104 = dma.hbm_to_vmem [thread:$0]  %s6020_s10, 256, %s99_s16, [#allocation12], %s4596_s19, %s4596_s19, %s4597_s20  }
  0x42   :  { %4578 = dma.done.wait [#allocation3], 256  }
  0x43   :  { %4579 = vsyncadd [#allocation3], 4294967040 }
  0x44   :  { %4580 = dma.done.wait [#allocation6], 512  }
  0x45   :  { %4581 = vsyncadd [#allocation6], 4294966784 }
  0x46   :  { %4582 = dma.done.wait [#allocation9], 512  }
  0x47   :  { %4583 = vsyncadd [#allocation9], 4294966784 }
  0x48   :  { %4584 = dma.done.wait [#allocation12], 256  }
  0x49   :  { %4585 = vsyncadd [#allocation12], 4294967040  ;;  %v4294_v0 = vld [vmem:[#allocation2 + $0x8] sm:$0xff]   ;;  %v4295_v1 = vld [vmem:[#allocation2] sm:$0xff]   ;;  %vm206_vm0 = vcmask 261120   ;;  %vm550_vm1 = vcmask 1041409  }
  0x4a   :  { %3988 = vmatprep.subr.bf16.mxu0 %v4294_v0  ;;  %v128_v2 = vld [vmem:[%s6010_s0] sm:$0xf]  ;;  %v129_v3 = vld [vmem:[%s6010_s0 + $0x4] sm:$0xf]  ;;  %v130_v4 = vld [vmem:[%s6010_s0 + $0x8] sm:$0xf] }
  0x4b   :  { %3989 = vmatpush3.bf16.msra.mxu0 %v4294_v0  ;;  %v3770_v5 = vcombine.low %v128_v2, %v129_v3  ;;  %v131_v6 = vld [vmem:[%s6010_s0 + $0xc] sm:$0xf]  ;;  %v3799_v7 = vcombine.low %v129_v3, %v129_v3  ;;  %v132_v8 = vld [vmem:[%s6010_s0 + $0x10] sm:$0xf]  ;;  %v4726_v9 = vld [vmem:[%s6010_s0 + $0x14] sm:$0xf]  ;;  %v3800_v11 = vcombine.low %v130_v4, %v130_v4  ;;  %v3798_v17 = vcombine.low %v128_v2, %v128_v2 }
  0x4c   :  { %3990 = vmatprep.subr.bf16.mxu0 %v4295_v1  ;;  %v4730_v10 = vcombine.low %v130_v4, %v131_v6  ;;  %v4302_v13 = vld [vmem:[%s6012_s2 + $0x8] sm:$0xff]   ;;  %v4736_v14 = vcombine.low %v132_v8, %v4726_v9  ;;  %v4598_v15 = vmov 0.0   ;;  %v4322_v16 = vld [vmem:[#allocation5 + $0x8] sm:$0xff]   ;;  %vm553_vm2 = vcmask 1042434   ;;  %v136_v20 = vld [vmem:[%s6010_s0 + $0x20] sm:$0xf] }
  0x4d   :  { %3992 = vmatprep.mubr.msk.bf16.mxu0 %vm206_vm0, %v3770_v5  ;;  %4012 = vmatprep.mubr.msk.bf16.mxu1 %vm206_vm0, %v3770_v5  ;;  %v534_v12 = vunpack.c.l.b16 %v3799_v7  ;;  %v4742_v18 = vld [vmem:[%s6010_s0 + $0x18] sm:$0xf]  ;;  %v4747_v19 = vld [vmem:[%s6010_s0 + $0x1c] sm:$0xf]  ;;  %v3801_v21 = vcombine.low %v131_v6, %v131_v6  ;;  %v535_v22 = vunpack.c.l.b16 %v3800_v11  ;;  %v137_v23 = vld [vmem:[%s6010_s0 + $0x24] sm:$0xf]  ;;  %v3806_v26 = vcombine.low %v136_v20, %v136_v20 }
  0x4e   :  { %4008 = vmatprep.subr.bf16.mxu1 %v4322_v16  ;;  %v4315_v25 = vld [vmem:[%s6012_s2] sm:$0xff]   ;;  %vm556_vm3 = vcmask 1043459   ;;  %v138_v27 = vld [vmem:[%s6010_s0 + $0x28] sm:$0xf]  ;;  %v140_v28 = vld [vmem:[%s6010_s0 + $0x30] sm:$0xf]  ;;  %v533_v29 = vunpack.c.l.b16 %v3798_v17  ;;  %v3807_v30 = vcombine.low %v137_v23, %v137_v23  ;;  %v3802_v35 = vcombine.low %v132_v8, %v132_v8 }
  0x4f   :  { %3991 = vmatpush3.bf16.msra.mxu0 %v4295_v1  ;;  %v549_v24 = vrot.slane %v534_v12, 7  ;;  %4009 = vmatpush3.bf16.msra.mxu1 %v4322_v16  ;;  %v139_v31 = vld [vmem:[%s6010_s0 + $0x2c] sm:$0xf]  ;;  %v141_v32 = vld [vmem:[%s6010_s0 + $0x34] sm:$0xf]  ;;  %v536_v33 = vunpack.c.l.b16 %v3801_v21  ;;  %v552_v34 = vrot.slane %v535_v22, 6  ;;  %v4777_v36 = vcombine.low %v4742_v18, %v4747_v19 }
  0x50   :  { %4028 = vmatprep.subr.bf16.mxu0 %v4598_v15  ;;  %v4779_v37 = vcombine.low %v136_v20, %v137_v23  ;;  %v541_v38 = vunpack.c.l.b16 %v3806_v26  ;;  %v542_v39 = vunpack.c.l.b16 %v3807_v30  ;;  %v3808_v40 = vcombine.low %v138_v27, %v138_v27  ;;  %v142_v41 = vld [vmem:[%s6010_s0 + $0x38] sm:$0xf]  ;;  %v143_v51 = vld [vmem:[%s6010_s0 + $0x3c] sm:$0xf]  ;;  %v4323_v30 = vld [vmem:[#allocation5] sm:$0xff]   ;;  %s4601_s24 = smov [#allocation13]  }
  0x51   :  { %v3803_v42 = vcombine.low %v4726_v9, %v4726_v9  ;;  %v3809_v43 = vcombine.low %v139_v31, %v139_v31  ;;  %v551_v44 = vsel %vm550_vm1, %v549_v24, %v533_v29  ;;  %v3810_v47 = vcombine.low %v140_v28, %v140_v28  ;;  %4010 = vmatprep.subr.bf16.mxu1 %v4323_v30  ;;  %s3755_s25 = sshll.u32 %s4601_s24, 4  ;;  %s3756_s25 = int_to_ptr.vmem [resolvable:$true] %s3755_s25 }
  0x52   :  { %3993 = vmatmul.mubr.msk.bf16.vlgmr.msra.gmra.mxu0 %vm206_vm0, %v4730_v10  ;;  %v570_v45 = vrot.slane %v542_v39, 7  ;;  %v543_v46 = vunpack.c.l.b16 %v3808_v40  ;;  %v537_v48 = vunpack.c.l.b16 %v3802_v35  ;;  %v3811_v50 = vcombine.low %v141_v32, %v141_v32  ;;  %s4558_s8 = scalar_lea.vmem %s3756_s25, 256  ;;  %p4563_p3 = scmp.lt.s32.totalorder %s3756_s25, %s3756_s25 }
  0x53   :  { %4029 = vmatpush3.bf16.msra.mxu0 %v4302_v13  ;;  %3996 = vmatprep.mubr.msk.bf16.mxu0 %vm206_vm0, %v4736_v14  ;;  %v544_v49 = vunpack.c.l.b16 %v3809_v43  ;;  %v555_v52 = vrot.slane %v536_v33, 5  ;;  %v545_v55 = vunpack.c.l.b16 %v3810_v47  ;;  %v554_v56 = vsel %vm553_vm2, %v552_v34, %v551_v44  ;;  %p4559_p2 = scmp.ne.s32.totalorder %s3756_s25, %s4558_s8  ;;  %p4564_p4 = scmp.lt.s32.totalorder %s4558_s8, %s4558_s8 }
  0x54   :  { %4030 = vmatprep.subr.bf16.mxu0 %v4598_v15  ;;  %v571_v53 = vsel %vm550_vm1, %v570_v45, %v541_v38  ;;  %v572_v54 = vrot.slane %v543_v46, 6  ;;  %v3804_v57 = vcombine.low %v4742_v18, %v4742_v18  ;;  %v3812_v59 = vcombine.low %v142_v41, %v142_v41  ;;  %4011 = vmatpush3.bf16.msra.mxu1 %v4323_v30 }
  0x55   :  { %v574_v58 = vrot.slane %v544_v49, 5  ;;  %v538_v60 = vunpack.c.l.b16 %v3803_v42  ;;  %vm559_vm4 = vcmask 1044484   ;;  %v546_v62 = vunpack.c.l.b16 %v3811_v50  ;;  %4036 = vmatprep.subr.bf16.mxu1 %v4598_v15  ;;  %p4565_p5 = por %p4564_p4, %p4563_p3 }
  0x56   :  { %v573_v61 = vsel %vm553_vm2, %v572_v54, %v571_v53  ;;  %v558_v63 = vrot.slane %v537_v48, 4  ;;  %v3805_v0 = vcombine.low %v4747_v19, %v4747_v19  ;;  %v3775_v1 = vcombine.low %v138_v27, %v139_v31 }
  0x57   :  { %4031 = vmatpush3.bf16.msra.mxu0 %v4315_v25  ;;  %v576_v2 = vrot.slane %v545_v55, 4  ;;  %v557_v3 = vsel %vm556_vm3, %v555_v52, %v554_v56  ;;  %v575_v4 = vsel %vm556_vm3, %v574_v58, %v573_v61  ;;  %v3776_v5 = vcombine.low %v140_v28, %v141_v32  ;;  %4013 = vmatmul.mubr.msk.bf16.vlgmr.msra.gmra.mxu1 %vm206_vm0, %v4730_v10  ;;  %v4837_v32 = vld [vmem:[#allocation11] sm:$0xff]  ;;  %p4566_p6 = pnand %p4565_p5, %p4559_p2 }
  0x58   :  { %4042 = vmatprep.subr.bf16.mxu0 %v4598_v15  ;;  %v3813_v6 = vcombine.low %v143_v51, %v143_v51  ;;  %v539_v7 = vunpack.c.l.b16 %v3804_v57  ;;  %v547_v8 = vunpack.c.l.b16 %v3812_v59  ;;  %v561_v9 = vrot.slane %v538_v60, 3  ;;  %4016 = vmatprep.mubr.msk.bf16.mxu1 %vm206_vm0, %v4736_v14 }
  0x59   :  { %v578_v11 = vrot.slane %v546_v62, 3  ;;  %v560_v12 = vsel %vm559_vm4, %v558_v63, %v557_v3  ;;  %vm562_vm5 = vcmask 1045509   ;;  %v577_v13 = vsel %vm559_vm4, %v576_v2, %v575_v4 }
  0x5a   :  { %3997 = vmatmul.mubr.msk.bf16.gmra.mxu0 %vm206_vm0, %v4777_v36  ;;  %v540_v16 = vunpack.c.l.b16 %v3805_v0  ;;  %v548_v17 = vunpack.c.l.b16 %v3813_v6  ;;  %v564_v18 = vrot.slane %v539_v7, 2  ;;  %v580_v19 = vrot.slane %v547_v8, 2 }
  0x5b   :  { %4000 = vmatprep.mubr.msk.bf16.mxu0 %vm206_vm0, %v4779_v37  ;;  %v563_v20 = vsel %vm562_vm5, %v561_v9, %v560_v12  ;;  %vm565_vm6 = vcmask 1046534   ;;  %v579_v21 = vsel %vm562_vm5, %v578_v11, %v577_v13  ;;  %v3777_v22 = vcombine.low %v142_v41, %v143_v51 }
  0x5c   :  { %v567_v23 = vrot.slane %v540_v16, 1  ;;  %v582_v24 = vrot.slane %v548_v17, 1  ;;  %v566_v25 = vsel %vm565_vm6, %v564_v18, %v563_v20  ;;  %vm568_vm7 = vcmask 1047559  }
  0x5d   :  { %v581_v26 = vsel %vm565_vm6, %v580_v19, %v579_v21  ;;  %vm4599_vm8 = vmmov 0   ;;  %v190_v31 = vlaneseq  ;;  %v4600_v58 = vmov 1966171168  }
  0x5e   :  { %v569_v27 = vsel %vm568_vm7, %v567_v23, %v566_v25  ;;  %v583_v28 = vsel %vm568_vm7, %v582_v24, %v581_v26  ;;  %v645_v59 = vunpack.c.l.s4 %v4600_v58  ;;  %vm1753_vm9 = vcmask 1043456  }
  0x5f   :  { %v584_v29 = vpack.c.b16 %v583_v28, %v569_v27  ;;  %4017 = vmatmul.mubr.msk.bf16.gmra.mxu1 %vm206_vm0, %v4777_v36  ;;  %v4834_v10 = vshrl.u32 %v190_v31, 7  ;;  %vm1556_vm10 = vcmask 57344   ;;  %vm1749_vm11 = vcmask 64512  }
  0x60   :  { %4020 = vmatprep.mubr.msk.bf16.mxu1 %vm206_vm0, %v4779_v37  ;;  %v646_v63 = vunpack.c.0.s8 %v645_v59 }
  0x61   :  { %v192_v14 = vsub.s32 1, %v4834_v10  ;;  %v4871_v57 = vsub.s32 0, %v4834_v10 }
  0x62   :  { %4001 = vmatmul.mubr.msk.bf16.gmra.mxu0 %vm206_vm0, %v3775_v1  ;;  %v4878_v4 = vsub.s32 %v646_v63, %v4834_v10 }
  0x63   :  { %4004 = vmatprep.mubr.msk.bf16.mxu0 %vm206_vm0, %v3776_v5  ;;  %v4842_v34 = vrot.slane %v4837_v32, %v192_v14  ;;  %v484_v62 = vrot.slane %v4837_v32, %v4871_v57 }
  0x67   :  { %4021 = vmatmul.mubr.msk.bf16.gmra.mxu1 %vm206_vm0, %v3775_v1 }
  0x68   :  { %4024 = vmatprep.mubr.msk.bf16.mxu1 %vm206_vm0, %v3776_v5 }
  0x6a   :  { %4005 = vmatmul.mubr.msk.bf16.gmra.mxu0 %vm206_vm0, %v3777_v22 }
  0x6b   :  { %4032 = vmatprep.mubr.msk.bf16.mxu0 %vm4599_vm8, %v4598_v15 }
  0x6f   :  { %4025 = vmatmul.mubr.msk.bf16.gmra.mxu1 %vm206_vm0, %v3777_v22 }
  0x70   :  { %4038 = vmatprep.mubr.msk.bf16.mxu1 %vm4599_vm8, %v4598_v15 }
  0x72   :  { %4033 = vmatmul.mubr.msk.bf16.vlgmr.msra.gmra.mxu0 %vm206_vm0, %v584_v29 }
  0x73   :  { %4044 = vmatprep.mubr.msk.bf16.mxu0 %vm4599_vm8, %v4598_v15 }
 0x112   :  { %v3994_v33 = vpop.f32.mrf.mxu0 }
 0x113   :  { %v274_v8 = vadd.f32 %v3994_v33, %v4842_v34 }
 0x114   :  { %v265_v35 = vpop.f32.mrf.mxu0 }
 0x115   :  { %v266_v36 = vadd.f32 %v265_v35, %v4842_v34  ;;  %v330_v13 = vpack.c.bf16 %v274_v8, %v274_v8 }
 0x116   :  { %v3995_v37 = vpop.f32.mrf.mxu0 }
 0x117   :  { %v328_v38 = vpack.c.bf16 %v266_v36, %v266_v36  ;;  %v277_v12 = vadd.f32 %v3995_v37, %v4842_v34  ;;  %v851_v22 = vsel %vm206_vm0, %v330_v13, 0 }
 0x118   :  { %v268_v39 = vpop.f32.mrf.mxu0 }
 0x119   :  { %v749_v40 = vsel %vm206_vm0, %v328_v38, 0  ;;  %v269_v41 = vadd.f32 %v268_v39, %v4842_v34  ;;  %v331_v21 = vpack.c.bf16 %v277_v12, %v277_v12 }
 0x11a   :  { %v4847_v42 = vpop.f32.mrf.mxu0  ;;  %4037 = vmatpush3.bf16.xpose.msra.mxu1 %v749_v40 }
 0x11b   :  { %v329_v43 = vpack.c.bf16 %v269_v41, %v269_v41  ;;  %4048 = vmatprep.subr.bf16.mxu1 %v4598_v15  ;;  %v902_v27 = vsel %vm206_vm0, %v331_v21, 0  ;;  %v290_v36 = vadd.f32 %v4847_v42, %v4842_v34 }
 0x11c   :  { %v281_v44 = vpop.f32.mrf.mxu0 }
 0x11d   :  { %v800_v45 = vsel %vm206_vm0, %v329_v43, 0  ;;  %v282_v23 = vadd.f32 %v281_v44, %v4842_v34  ;;  %v334_v42 = vpack.c.bf16 %v290_v36, %v290_v36 }
 0x11e   :  { %v4851_v46 = vpop.f32.mrf.mxu0  ;;  %4043 = vmatpush3.bf16.xpose.msra.mxu0 %v800_v45 }
 0x11f   :  { %4054 = vmatprep.subr.bf16.mxu0 %v4598_v15  ;;  %v332_v29 = vpack.c.bf16 %v282_v23, %v282_v23  ;;  %v293_v41 = vadd.f32 %v4851_v46, %v4842_v34  ;;  %v1055_v46 = vsel %vm206_vm0, %v334_v42, 0 }
 0x120   :  { %v284_v47 = vpop.f32.mrf.mxu0 }
 0x121   :  { %v285_v28 = vadd.f32 %v284_v47, %v4842_v34  ;;  %v953_v37 = vsel %vm206_vm0, %v332_v29, 0  ;;  %v335_v58 = vpack.c.bf16 %v293_v41, %v293_v41 }
 0x122   :  { %v4854_v48 = vpop.f32.mrf.mxu0 }
 0x123   :  { %v333_v35 = vpack.c.bf16 %v285_v28, %v285_v28 }
 0x124   :  { %v4856_v49 = vpop.f32.mrf.mxu0 }
 0x125   :  { %v1004_v43 = vsel %vm206_vm0, %v333_v35, 0  ;;  %v298_v59 = vadd.f32 %v4856_v49, %v4842_v34 }
 0x126   :  { %v4858_v50 = vpop.f32.mrf.mxu0 }
 0x128   :  { %v4860_v51 = vpop.f32.mrf.mxu0 }
 0x129   :  { %v301_v49 = vadd.f32 %v4860_v51, %v4842_v34 }
 0x12a   :  { %v4006_v52 = vpop.f32.mrf.mxu0 }
 0x12b   :  { %v4863_v53 = vadd.f32 %v4006_v52, %v4842_v34 }
 0x12c   :  { %v4865_v54 = vpop.f32.mrf.mxu0 }
 0x12e   :  { %v4007_v55 = vpop.f32.mrf.mxu0 }
 0x12f   :  { %v4868_v56 = vadd.f32 %v4007_v55, %v4842_v34  ;;  %v350_v55 = vsub.s32 2, %v4834_v10 }
 0x130   :  { %v4873_v60 = vpop.f32.mrf.mxu0 }
 0x132   :  { %v634_v61 = vpop.f32.mrf.mxu0 }
 0x133   :  { %v635_v2 = vadd.f32 %v634_v61, %v484_v62 }
 0x134   :  { %v4034_v0 = vpop.f32.mrf.mxu0 }
 0x136   :  { %v637_v1 = vpop.f32.mrf.mxu0 }
 0x137   :  { %v638_v3 = vadd.f32 %v637_v1, %v484_v62  ;;  %v4927_v1 = vrot.slane %v4837_v32, %v350_v55  ;;  %v4014_v32 = vpop.f32.mrf.mxu1 }
 0x138   :  { %v4035_v5 = vpop.f32.mrf.mxu0 }
 0x139   :  { %v641_v6 = vpack.c.bf16 %v638_v3, %v635_v2  ;;  %v3817_v44 = vpack.c.bf16 %v638_v3, %v638_v3  ;;  %v1106_v2 = vsel %vm206_vm0, %v335_v58, 0  ;;  %v336_v3 = vpack.c.bf16 %v298_v59, %v298_v59  ;;  %v4941_v51 = vpop.f32.mrf.mxu1 }
 0x13a   :  { %v407_v8 = vadd.f32 %v4014_v32, %v4927_v1 }
 0x13b   :  { %v650_v7 = vrot.slane %v641_v6, %v4878_v4  ;;  %v657_v61 = vrot.slane %v3817_v44, %v4878_v4  ;;  %v1157_v12 = vsel %vm206_vm0, %v336_v3, 0 }
 0x13c   :  { %v463_v13 = vpack.c.bf16 %v407_v8, %v407_v8 }
 0x13d   :  { %v658_v9 = vcombine.high %v650_v7, %v650_v7  ;;  %v666_v11 = vrot.slane %v650_v7, %v4878_v4  ;;  %v4936_v5 = vrot.slane %v657_v61, %v4878_v4 }
 0x13f   :  { %v693_v16 = vunpack.i.h.s16 %v666_v11  ;;  %v3818_v17 = vpack.i.b16 %v666_v11, %v666_v11  ;;  %v680_v18 = vrot.slane %v658_v9, %v4878_v4  ;;  %v688_v30 = vcombine.high %v666_v11, %v666_v11 }
 0x140   :  { %v337_v9 = vpack.c.bf16 %v301_v49, %v301_v49  ;;  %v306_v11 = vadd.f32 %v4854_v48, %v4842_v34  ;;  %v4955_v48 = vsel %vm1753_vm9, %v463_v13, 0 }
 0x141   :  { %v744_v19 = vrot.slane %v3818_v17, %v4871_v57  ;;  %v791_v20 = vpack.i.b16 %v693_v16, %v693_v16  ;;  %v695_v24 = vunpack.i.h.s16 %v680_v18  ;;  %v3821_v26 = vpack.i.b16 %v680_v18, %v680_v18 }
 0x142   :  { %v697_v38 = vunpack.i.h.s16 %v688_v30  ;;  %v3824_v40 = vpack.i.b16 %v688_v30, %v688_v30  ;;  %v690_v45 = vcombine.high %v680_v18, %v680_v18  ;;  %v659_v16 = vcombine.high %v657_v61, %v657_v61 }
 0x143   :  { %4039 = vmatmul.mubr.msk.bf16.vlgmr.msra.gmra.mxu1 %vm206_vm0, %v744_v19  ;;  %v795_v25 = vrot.slane %v791_v20, %v4871_v57  ;;  %v893_v31 = vpack.i.b16 %v695_v24, %v695_v24  ;;  %v846_v33 = vrot.slane %v3821_v26, %v4871_v57  ;;  %v701_v17 = vunpack.i.h.s16 %v4936_v5  ;;  %v4015_v19 = vpop.f32.mrf.mxu1 }
 0x144   :  { %4049 = vmatpush3.bf16.xpose.msra.mxu1 %v851_v22  ;;  %4050 = vmatprep.mubr.msk.bf16.mxu1 %vm4599_vm8, %v4598_v15  ;;  %v995_v47 = vpack.i.b16 %v697_v38, %v697_v38  ;;  %v948_v52 = vrot.slane %v3824_v40, %v4871_v57  ;;  %v699_v63 = vunpack.i.h.s16 %v690_v45  ;;  %v3827_v0 = vpack.i.b16 %v690_v45, %v690_v45 }
 0x145   :  { %4060 = vmatprep.subr.bf16.mxu1 %v4598_v15  ;;  %4045 = vmatmul.mubr.msk.bf16.vlgmr.msra.gmra.mxu0 %vm206_vm0, %v795_v25  ;;  %v897_v39 = vrot.slane %v893_v31, %v4871_v57  ;;  %v3830_v20 = vpack.i.b16 %v4936_v5, %v4936_v5  ;;  %v410_v21 = vadd.f32 %v4015_v19, %v4927_v1  ;;  %v1208_v23 = vsel %vm206_vm0, %v337_v9, 0  ;;  %v4962_v24 = vpop.f32.mrf.mxu1 }
 0x146   :  { %4055 = vmatpush3.bf16.xpose.msra.mxu0 %v902_v27  ;;  %4056 = vmatprep.mubr.msk.bf16.mxu0 %vm4599_vm8, %v4598_v15  ;;  %v999_v62 = vrot.slane %v995_v47, %v4871_v57  ;;  %v1097_v6 = vpack.i.b16 %v699_v63, %v699_v63  ;;  %v1050_v7 = vrot.slane %v3827_v0, %v4871_v57 }
 0x147   :  { %4066 = vmatprep.subr.bf16.mxu0 %v4598_v15  ;;  %v309_v22 = vadd.f32 %v4858_v50, %v4842_v34  ;;  %v338_v25 = vpack.c.bf16 %v306_v11, %v306_v11  ;;  %v464_v26 = vpack.c.bf16 %v410_v21, %v410_v21  ;;  %v4967_v27 = vrot.slane %v659_v16, %v4878_v4  ;;  %v4018_v29 = vpop.f32.mrf.mxu1 }
 0x148   :  { %v1101_v18 = vrot.slane %v1097_v6, %v4871_v57  ;;  %v1199_v28 = vpack.i.b16 %v701_v17, %v701_v17  ;;  %v1152_v50 = vrot.slane %v3830_v20, %v4871_v57  ;;  %v423_v31 = vadd.f32 %v4018_v29, %v4927_v1 }
 0x149   :  { %v4972_v30 = vsel %vm1753_vm9, %v464_v26, 0  ;;  %v414_v35 = vpop.f32.mrf.mxu1  ;;  %v1259_v36 = vsel %vm206_vm0, %v338_v25, 0  ;;  %v317_v47 = vadd.f32 %v4873_v60, %v4842_v34  ;;  %v689_v61 = vcombine.high %v4936_v5, %v4936_v5 }
 0x14a   :  { %v467_v4 = vpack.c.bf16 %v423_v31, %v423_v31  ;;  %v415_v38 = vadd.f32 %v414_v35, %v4927_v1  ;;  %v1203_v40 = vrot.slane %v1199_v28, %v4871_v57  ;;  %v342_v20 = vpack.c.bf16 %v4863_v53, %v4863_v53 }
 0x14b   :  { %4051 = vmatmul.mubr.msk.bf16.vlgmr.msra.gmra.mxu1 %vm206_vm0, %v846_v33  ;;  %v339_v33 = vpack.c.bf16 %v309_v22, %v309_v22  ;;  %v4019_v41 = vpop.f32.mrf.mxu1  ;;  %v341_v49 = vpack.c.bf16 %v317_v47, %v317_v47  ;;  %v705_v8 = vunpack.i.h.s16 %v689_v61  ;;  %v3836_v9 = vpack.i.b16 %v689_v61, %v689_v61 }
 0x14c   :  { %4061 = vmatpush3.bf16.xpose.msra.mxu1 %v953_v37  ;;  %4062 = vmatprep.mubr.msk.bf16.mxu1 %vm4599_vm8, %v4598_v15  ;;  %v314_v37 = vadd.f32 %v4865_v54, %v4842_v34  ;;  %v4988_v54 = vsel %vm1753_vm9, %v467_v4, 0  ;;  %v465_v42 = vpack.c.bf16 %v415_v38, %v415_v38  ;;  %v426_v44 = vadd.f32 %v4019_v41, %v4927_v1 }
 0x14d   :  { %4072 = vmatprep.subr.bf16.mxu1 %v4598_v15  ;;  %4057 = vmatmul.mubr.msk.bf16.vlgmr.msra.gmra.mxu0 %vm206_vm0, %v897_v39  ;;  %v703_v39 = vunpack.i.h.s16 %v4967_v27  ;;  %v1310_v45 = vsel %vm206_vm0, %v339_v33, 0  ;;  %v691_v25 = vcombine.high %v4967_v27, %v4967_v27  ;;  %v1403_v26 = vpack.i.b16 %v705_v8, %v705_v8 }
 0x14e   :  { %4067 = vmatpush3.bf16.xpose.msra.mxu0 %v1004_v43  ;;  %4068 = vmatprep.mubr.msk.bf16.mxu0 %vm4599_vm8, %v4598_v15  ;;  %v3833_v43 = vpack.i.b16 %v4967_v27, %v4967_v27  ;;  %v340_v55 = vpack.c.bf16 %v314_v37, %v314_v37  ;;  %v4998_v58 = vsel %vm1753_vm9, %v465_v42, 0  ;;  %v1356_v28 = vrot.slane %v3836_v9, %v4871_v57  ;;  %v146_v9 = vld [vmem:[%s6011_s1 + $0x2] sm:$0x1] }
 0x14f   :  { %4078 = vmatprep.subr.bf16.mxu0 %v4598_v15  ;;  %v399_v53 = vadd.f32 %v4941_v51, %v4927_v1  ;;  %v343_v35 = vpack.c.bf16 %v4868_v56, %v4868_v56  ;;  %v1463_v27 = vsel %vm206_vm0, %v342_v20, 0  ;;  %v1407_v38 = vrot.slane %v1403_v26, %v4871_v57 }
 0x150   :  { %v1254_v60 = vrot.slane %v3833_v43, %v4871_v57  ;;  %v1361_v6 = vsel %vm206_vm0, %v340_v55, 0  ;;  %v402_v56 = vadd.f32 %v4962_v24, %v4927_v1 }
 0x151   :  { %v461_v43 = vpack.c.bf16 %v399_v53, %v399_v53  ;;  %v1514_v47 = vsel %vm206_vm0, %v343_v35, 0 }
 0x152   :  { %v462_v61 = vpack.c.bf16 %v402_v56, %v402_v56 }
 0x153   :  { %4063 = vmatmul.mubr.msk.bf16.vlgmr.msra.gmra.mxu1 %vm206_vm0, %v948_v52  ;;  %v417_v52 = vpop.f32.mrf.mxu1 }
 0x154   :  { %4073 = vmatpush3.bf16.xpose.msra.mxu1 %v1055_v46  ;;  %4074 = vmatprep.mubr.msk.bf16.mxu1 %vm4599_vm8, %v4598_v15  ;;  %v468_v46 = vpack.c.bf16 %v426_v44, %v426_v44  ;;  %v418_v59 = vadd.f32 %v417_v52, %v4927_v1 }
 0x155   :  { %4084 = vmatprep.subr.bf16.mxu1 %v4598_v15  ;;  %4069 = vmatmul.mubr.msk.bf16.vlgmr.msra.gmra.mxu0 %vm206_vm0, %v999_v62  ;;  %v1301_v62 = vpack.i.b16 %v703_v39, %v703_v39  ;;  %v4022_v34 = vpop.f32.mrf.mxu1  ;;  %v3839_v39 = vpack.i.b16 %v691_v25, %v691_v25 }
 0x156   :  { %4079 = vmatpush3.bf16.xpose.msra.mxu0 %v1106_v2  ;;  %4080 = vmatprep.mubr.msk.bf16.mxu0 %vm4599_vm8, %v4598_v15  ;;  %v5006_v63 = vsel %vm1753_vm9, %v468_v46, 0  ;;  %v466_v0 = vpack.c.bf16 %v418_v59, %v418_v59  ;;  %v439_v2 = vadd.f32 %v4022_v34, %v4927_v1  ;;  %v1755_v34 = vsel %vm1753_vm9, %v461_v43, 0 }
 0x157   :  { %4090 = vmatprep.subr.bf16.mxu0 %v4598_v15  ;;  %v430_v3 = vpop.f32.mrf.mxu1  ;;  %v1305_v11 = vrot.slane %v1301_v62, %v4871_v57  ;;  %v1458_v62 = vrot.slane %v3839_v39, %v4871_v57  ;;  %v149_v39 = vld [vmem:[%s6011_s1 + $0x5] sm:$0x1] }
 0x158   :  { %v5012_v5 = vsel %vm1753_vm9, %v466_v0, 0  ;;  %v471_v32 = vpack.c.bf16 %v439_v2, %v439_v2 }
 0x15a   :  { %v5020_v13 = vsel %vm1753_vm9, %v471_v32, 0  ;;  %v145_v32 = vld [vmem:[%s6011_s1 + $0x1] sm:$0x1] }
 0x15b   :  { %4075 = vmatmul.mubr.msk.bf16.vlgmr.msra.gmra.mxu1 %vm206_vm0, %v1050_v7  ;;  %v431_v7 = vadd.f32 %v430_v3, %v4927_v1  ;;  %v144_v3 = vld [vmem:[%s6011_s1] sm:$0x1] }
 0x15c   :  { %4085 = vmatpush3.bf16.xpose.msra.mxu1 %v1157_v12  ;;  %4086 = vmatprep.mubr.msk.bf16.mxu1 %vm4599_vm8, %v4598_v15  ;;  %v4023_v12 = vpop.f32.mrf.mxu1 }
 0x15d   :  { %4096 = vmatprep.subr.bf16.mxu1 %v4598_v15  ;;  %4081 = vmatmul.mubr.msk.bf16.vlgmr.msra.gmra.mxu0 %vm206_vm0, %v1101_v18  ;;  %v469_v16 = vpack.c.bf16 %v431_v7, %v431_v7  ;;  %v442_v17 = vadd.f32 %v4023_v12, %v4927_v1  ;;  %v1412_v18 = vsel %vm206_vm0, %v341_v49, 0  ;;  %v709_v7 = vsub.f32 1.0, %v145_v32 }
 0x15e   :  { %4091 = vmatpush3.bf16.xpose.msra.mxu0 %v1208_v23  ;;  %4092 = vmatprep.mubr.msk.bf16.mxu0 %vm4599_vm8, %v4598_v15  ;;  %v433_v19 = vpop.f32.mrf.mxu1 }
 0x15f   :  { %4102 = vmatprep.subr.bf16.mxu0 %v4598_v15  ;;  %v5030_v21 = vsel %vm1753_vm9, %v469_v16, 0  ;;  %v472_v22 = vpack.c.bf16 %v442_v17, %v442_v17  ;;  %v434_v23 = vadd.f32 %v433_v19, %v4927_v1  ;;  %v725_v12 = vmul.f32 -1e+09, %v709_v7 }
 0x160   :  { %v4026_v29 = vpop.f32.mrf.mxu1  ;;  %v710_v17 = vsub.f32 1.0, %v146_v9 }
 0x161   :  { %v470_v31 = vpack.c.bf16 %v434_v23, %v434_v23  ;;  %v455_v33 = vadd.f32 %v4026_v29, %v4927_v1 }
 0x162   :  { %v726_v29 = vmul.f32 -1e+09, %v710_v17 }
 0x163   :  { %4087 = vmatmul.mubr.msk.bf16.vlgmr.msra.gmra.mxu1 %vm206_vm0, %v1152_v50  ;;  %v5040_v50 = vsel %vm1753_vm9, %v472_v22, 0  ;;  %v5048_v37 = vsel %vm1753_vm9, %v470_v31, 0  ;;  %v475_v4 = vpack.c.bf16 %v455_v33, %v455_v33  ;;  %v148_v31 = vld [vmem:[%s6011_s1 + $0x4] sm:$0x1] }
 0x164   :  { %4097 = vmatpush3.bf16.xpose.msra.mxu1 %v1259_v36  ;;  %4098 = vmatprep.mubr.msk.bf16.mxu1 %vm4599_vm8, %v4598_v15  ;;  %v446_v36 = vpop.f32.mrf.mxu1 }
 0x165   :  { %4108 = vmatprep.subr.bf16.mxu1 %v4598_v15  ;;  %4093 = vmatmul.mubr.msk.bf16.vlgmr.msra.gmra.mxu0 %vm206_vm0, %v1203_v40  ;;  %v447_v51 = vadd.f32 %v446_v36, %v4927_v1  ;;  %v707_v40 = vunpack.i.h.s16 %v691_v25  ;;  %v5058_v42 = vsel %vm1753_vm9, %v475_v4, 0 }
 0x166   :  { %4103 = vmatpush3.bf16.xpose.msra.mxu0 %v1310_v45  ;;  %4104 = vmatprep.mubr.msk.bf16.mxu0 %vm4599_vm8, %v4598_v15  ;;  %v4027_v41 = vpop.f32.mrf.mxu1 }
 0x167   :  { %4114 = vmatprep.subr.bf16.mxu0 %v4598_v15  ;;  %v473_v44 = vpack.c.bf16 %v447_v51, %v447_v51  ;;  %v458_v45 = vadd.f32 %v4027_v41, %v4927_v1  ;;  %v1505_v59 = vpack.i.b16 %v707_v40, %v707_v40 }
 0x168   :  { %v449_v52 = vpop.f32.mrf.mxu1 }
 0x169   :  { %v5066_v24 = vsel %vm1753_vm9, %v473_v44, 0  ;;  %v476_v55 = vpack.c.bf16 %v458_v45, %v458_v45  ;;  %v450_v46 = vadd.f32 %v449_v52, %v4927_v1  ;;  %v1509_v49 = vrot.slane %v1505_v59, %v4871_v57 }
 0x16a   :  { %v1801_v1 = vsel %vm1753_vm9, %v462_v61, 0  ;;  %v713_v45 = vsub.f32 1.0, %v149_v39 }
 0x16b   :  { %4099 = vmatmul.mubr.msk.bf16.vlgmr.msra.gmra.mxu1 %vm206_vm0, %v1254_v60  ;;  %v5073_v60 = vsel %vm1753_vm9, %v476_v55, 0  ;;  %v474_v0 = vpack.c.bf16 %v450_v46, %v450_v46  ;;  %v150_v46 = vld [vmem:[%s6011_s1 + $0x6] sm:$0x1] }
 0x16c   :  { %4109 = vmatpush3.bf16.xpose.msra.mxu1 %v1361_v6  ;;  %4110 = vmatprep.mubr.msk.bf16.mxu1 %vm4599_vm8, %v4598_v15  ;;  %v708_v6 = vsub.f32 1.0, %v144_v3  ;;  %v151_v3 = vld [vmem:[%s6011_s1 + $0x7] sm:$0x1] }
 0x16d   :  { %4120 = vmatprep.subr.bf16.mxu1 %v4598_v15  ;;  %4105 = vmatmul.mubr.msk.bf16.vlgmr.msra.gmra.mxu0 %vm206_vm0, %v1305_v11  ;;  %v5077_v2 = vsel %vm1753_vm9, %v474_v0, 0 }
 0x16e   :  { %4115 = vmatpush3.bf16.xpose.msra.mxu0 %v1412_v18  ;;  %4116 = vmatprep.mubr.msk.bf16.mxu0 %vm4599_vm8, %v4598_v15  ;;  %v724_v8 = vmul.f32 -1e+09, %v708_v6  ;;  %v147_v18 = vld [vmem:[%s6011_s1 + $0x3] sm:$0x1] }
 0x16f   :  { %4126 = vmatprep.subr.bf16.mxu0 %v4598_v15  ;;  %v711_v26 = vsub.f32 1.0, %v147_v18 }
 0x173   :  { %4111 = vmatmul.mubr.msk.bf16.vlgmr.msra.gmra.mxu1 %vm206_vm0, %v1356_v28 }
 0x174   :  { %4121 = vmatpush3.bf16.xpose.msra.mxu1 %v1463_v27  ;;  %4122 = vmatprep.mubr.msk.bf16.mxu1 %vm4599_vm8, %v4598_v15  ;;  %v727_v27 = vmul.f32 -1e+09, %v711_v26 }
 0x175   :  { %4132 = vmatprep.subr.bf16.mxu1 %v4598_v15  ;;  %4117 = vmatmul.mubr.msk.bf16.vlgmr.msra.gmra.mxu0 %vm206_vm0, %v1407_v38  ;;  %v712_v38 = vsub.f32 1.0, %v148_v31  ;;  %v153_v31 = vld [vmem:[%s6011_s1 + $0x9] sm:$0x1] }
 0x176   :  { %4127 = vmatpush3.bf16.xpose.msra.mxu0 %v1514_v47  ;;  %4128 = vmatprep.mubr.msk.bf16.mxu0 %vm4599_vm8, %v4598_v15 }
 0x177   :  { %4138 = vmatprep.subr.bf16.mxu0 %v4598_v15  ;;  %v728_v52 = vmul.f32 -1e+09, %v712_v38  ;;  %v717_v38 = vsub.f32 1.0, %v153_v31 }
 0x17b   :  { %4123 = vmatmul.mubr.msk.bf16.vlgmr.msra.gmra.mxu1 %vm206_vm0, %v1458_v62 }
 0x17c   :  { %4133 = vmatpush3.bf16.msra.mxu1 %v1755_v34  ;;  %4134 = vmatprep.mubr.msk.bf16.mxu1 %vm4599_vm8, %v4598_v15  ;;  %v729_v34 = vmul.f32 -1e+09, %v713_v45 }
 0x17d   :  { %4144 = vmatprep.subr.bf16.mxu1 %v4598_v15  ;;  %4129 = vmatmul.mubr.msk.bf16.vlgmr.msra.gmra.mxu0 %vm206_vm0, %v1509_v49 }
 0x17e   :  { %4139 = vmatpush3.bf16.msra.mxu0 %v1801_v1  ;;  %4140 = vmatprep.mubr.msk.bf16.mxu0 %vm4599_vm8, %v4598_v15  ;;  %v714_v1 = vsub.f32 1.0, %v150_v46 }
 0x17f   :  { %4150 = vmatprep.subr.bf16.mxu0 %v4598_v15 }
 0x180   :  { %v730_v17 = vmul.f32 -1e+09, %v714_v1 }
 0x203   :  { %v785_v11 = vpop.f32.mrf.mxu1 }
 0x204   :  { %v5097_v16 = vadd.f32 %v785_v11, %v724_v8  ;;  %v715_v11 = vsub.f32 1.0, %v151_v3 }
 0x205   :  { %v4040_v19 = vpop.f32.mrf.mxu1  ;;  %v836_v20 = vpop.f32.mrf.mxu0 }
 0x206   :  { %v1557_v22 = vsel %vm1556_vm10, %v5097_v16, -inf  ;;  %v5104_v23 = vadd.f32 %v836_v20, %v725_v12  ;;  %v152_v20 = vld [vmem:[%s6011_s1 + $0x8] sm:$0x1]  ;;  %v731_v26 = vmul.f32 -1e+09, %v715_v11 }
 0x207   :  { %1558 = vmax.xlane.f32.xlu0 %v1557_v22  ;;  %v788_v25 = vpop.f32.mrf.mxu1  ;;  %v4046_v28 = vpop.f32.mrf.mxu0 }
 0x208   :  { %v1560_v35 = vsel %vm1556_vm10, %v5104_v23, -inf }
 0x209   :  { %v4041_v53 = vpop.f32.mrf.mxu1  ;;  %v839_v33 = vpop.f32.mrf.mxu0 }
 0x20a   :  { %v716_v53 = vsub.f32 1.0, %v152_v20 }
 0x20b   :  { %1561 = vmax.xlane.f32.xlu0 %v1560_v35  ;;  %v887_v36 = vpop.f32.mrf.mxu1  ;;  %v4047_v4 = vpop.f32.mrf.mxu0 }
 0x20c   :  { %v5111_v51 = vadd.f32 %v887_v36, %v726_v29 }
 0x20d   :  { %v4052_v40 = vpop.f32.mrf.mxu1  ;;  %v938_v56 = vpop.f32.mrf.mxu0 }
 0x20e   :  { %v1563_v41 = vsel %vm1556_vm10, %v5111_v51, -inf  ;;  %v5118_v43 = vadd.f32 %v938_v56, %v727_v27  ;;  %v732_v40 = vmul.f32 -1e+09, %v716_v53 }
 0x20f   :  { %1564 = vmax.xlane.f32.xlu1 %v1563_v41  ;;  %v890_v44 = vpop.f32.mrf.mxu1  ;;  %v4058_v47 = vpop.f32.mrf.mxu0 }
 0x210   :  { %v1566_v61 = vsel %vm1556_vm10, %v5118_v43, -inf  ;;  %v154_v44 = vld [vmem:[%s6011_s1 + $0xa] sm:$0x1] }
 0x211   :  { %v4053_v55 = vpop.f32.mrf.mxu1  ;;  %v941_v59 = vpop.f32.mrf.mxu0 }
 0x212   :  { %v718_v59 = vsub.f32 1.0, %v154_v44 }
 0x213   :  { %1567 = vmax.xlane.f32.xlu1 %v1566_v61  ;;  %v989_v62 = vpop.f32.mrf.mxu1  ;;  %v4059_v0 = vpop.f32.mrf.mxu0  ;;  %v155_v61 = vld [vmem:[%s6011_s1 + $0xb] sm:$0x1] }
 0x214   :  { %v5125_v49 = vadd.f32 %v989_v62, %v728_v52  ;;  %v733_v52 = vmul.f32 -1e+09, %v717_v38 }
 0x215   :  { %v4064_v6 = vpop.f32.mrf.mxu1  ;;  %v1040_v32 = vpop.f32.mrf.mxu0 }
 0x216   :  { %v1569_v7 = vsel %vm1556_vm10, %v5125_v49, -inf  ;;  %v5132_v8 = vadd.f32 %v1040_v32, %v729_v34  ;;  %v719_v6 = vsub.f32 1.0, %v155_v61 }
 0x217   :  { %1570 = vmax.xlane.f32.xlu0 %v1569_v7  ;;  %v992_v9 = vpop.f32.mrf.mxu1  ;;  %v4070_v12 = vpop.f32.mrf.mxu0  ;;  %v734_v7 = vmul.f32 -1e+09, %v718_v59  ;;  %v159_v59 = vld [vmem:[%s6011_s1 + $0xf] sm:$0x1] }
 0x218   :  { %v1572_v18 = vsel %vm1556_vm10, %v5132_v8, -inf  ;;  %v156_v12 = vld [vmem:[%s6011_s1 + $0xc] sm:$0x1] }
 0x219   :  { %v4065_v19 = vpop.f32.mrf.mxu1  ;;  %v1043_v22 = vpop.f32.mrf.mxu0  ;;  %1573 = vmax.xlane.f32.xlu1 %v1572_v18 }
 0x21a   :  { %v735_v19 = vmul.f32 -1e+09, %v719_v6  ;;  %v723_v6 = vsub.f32 1.0, %v159_v59 }
 0x21b   :  { %v1091_v25 = vpop.f32.mrf.mxu1  ;;  %v4071_v28 = vpop.f32.mrf.mxu0 }
 0x21c   :  { %v5139_v29 = vadd.f32 %v1091_v25, %v730_v17  ;;  %v720_v25 = vsub.f32 1.0, %v156_v12 }
 0x21d   :  { %v4076_v33 = vpop.f32.mrf.mxu1  ;;  %v1142_v35 = vpop.f32.mrf.mxu0 }
 0x21e   :  { %v1575_v36 = vsel %vm1556_vm10, %v5139_v29, -inf  ;;  %v5146_v27 = vadd.f32 %v1142_v35, %v731_v26  ;;  %v157_v26 = vld [vmem:[%s6011_s1 + $0xd] sm:$0x1]  ;;  %v736_v38 = vmul.f32 -1e+09, %v720_v25 }
 0x21f   :  { %1576 = vmax.xlane.f32.xlu0 %v1575_v36  ;;  %v1094_v4 = vpop.f32.mrf.mxu1  ;;  %v4082_v39 = vpop.f32.mrf.mxu0  ;;  %v721_v36 = vsub.f32 1.0, %v157_v26 }
 0x220   :  { %v1578_v56 = vsel %vm1556_vm10, %v5146_v27, -inf }
 0x221   :  { %v4077_v41 = vpop.f32.mrf.mxu1  ;;  %v1145_v45 = vpop.f32.mrf.mxu0  ;;  %1579 = vmax.xlane.f32.xlu1 %v1578_v56  ;;  %v158_v56 = vld [vmem:[%s6011_s1 + $0xe] sm:$0x1] }
 0x222   :  { %v737_v45 = vmul.f32 -1e+09, %v721_v36 }
 0x223   :  { %v1193_v47 = vpop.f32.mrf.mxu1  ;;  %v4083_v55 = vpop.f32.mrf.mxu0 }
 0x224   :  { %v5153_v46 = vadd.f32 %v1193_v47, %v732_v40  ;;  %v722_v55 = vsub.f32 1.0, %v158_v56 }
 0x225   :  { %v4088_v62 = vpop.f32.mrf.mxu1  ;;  %v1244_v34 = vpop.f32.mrf.mxu0 }
 0x226   :  { %v1581_v0 = vsel %vm1556_vm10, %v5153_v46, -inf  ;;  %v5160_v1 = vadd.f32 %v1244_v34, %v733_v52 }
 0x227   :  { %1582 = vmax.xlane.f32.xlu0 %v1581_v0  ;;  %v1196_v3 = vpop.f32.mrf.mxu1  ;;  %v4094_v32 = vpop.f32.mrf.mxu0 }
 0x228   :  { %v1584_v9 = vsel %vm1556_vm10, %v5160_v1, -inf }
 0x229   :  { %v4089_v11 = vpop.f32.mrf.mxu1  ;;  %v1247_v17 = vpop.f32.mrf.mxu0  ;;  %1585 = vmax.xlane.f32.xlu1 %v1584_v9 }
 0x22b   :  { %v1295_v18 = vpop.f32.mrf.mxu1  ;;  %v4095_v20 = vpop.f32.mrf.mxu0 }
 0x22c   :  { %v5167_v22 = vadd.f32 %v1295_v18, %v734_v7  ;;  %v738_v7 = vmul.f32 -1e+09, %v722_v55  ;;  %v739_v18 = vmul.f32 -1e+09, %v723_v6 }
 0x22d   :  { %v4100_v28 = vpop.f32.mrf.mxu1  ;;  %v1346_v53 = vpop.f32.mrf.mxu0 }
 0x22e   :  { %v1587_v31 = vsel %vm1556_vm10, %v5167_v22, -inf  ;;  %v5174_v33 = vadd.f32 %v1346_v53, %v735_v19 }
 0x22f   :  { %1588 = vmax.xlane.f32.xlu0 %v1587_v31  ;;  %v1298_v35 = vpop.f32.mrf.mxu1  ;;  %v4106_v4 = vpop.f32.mrf.mxu0 }
 0x230   :  { %v1590_v39 = vsel %vm1556_vm10, %v5174_v33, -inf }
 0x231   :  { %v4101_v40 = vpop.f32.mrf.mxu1  ;;  %v1349_v41 = vpop.f32.mrf.mxu0  ;;  %1591 = vmax.xlane.f32.xlu1 %v1590_v39 }
 0x233   :  { %v1397_v44 = vpop.f32.mrf.mxu1  ;;  %v4107_v47 = vpop.f32.mrf.mxu0 }
 0x234   :  { %v5181_v52 = vadd.f32 %v1397_v44, %v736_v38 }
 0x235   :  { %v4112_v61 = vpop.f32.mrf.mxu1  ;;  %v1448_v62 = vpop.f32.mrf.mxu0 }
 0x236   :  { %v1593_v34 = vsel %vm1556_vm10, %v5181_v52, -inf  ;;  %v5188_v0 = vadd.f32 %v1448_v62, %v737_v45 }
 0x237   :  { %1594 = vmax.xlane.f32.xlu0 %v1593_v34  ;;  %v1400_v3 = vpop.f32.mrf.mxu1  ;;  %v4118_v32 = vpop.f32.mrf.mxu0 }
 0x238   :  { %v1596_v9 = vsel %vm1556_vm10, %v5188_v0, -inf }
 0x239   :  { %v4113_v11 = vpop.f32.mrf.mxu1  ;;  %v1451_v12 = vpop.f32.mrf.mxu0  ;;  %1597 = vmax.xlane.f32.xlu1 %v1596_v9 }
 0x23b   :  { %v1499_v17 = vpop.f32.mrf.mxu1  ;;  %v4119_v19 = vpop.f32.mrf.mxu0 }
 0x23c   :  { %v5192_v20 = vadd.f32 %v1499_v17, %v738_v7 }
 0x23d   :  { %v4124_v25 = vpop.f32.mrf.mxu1  ;;  %v1550_v26 = vpop.f32.mrf.mxu0 }
 0x23e   :  { %v1599_v28 = vsel %vm1556_vm10, %v5192_v20, -inf  ;;  %v5196_v53 = vadd.f32 %v1550_v26, %v739_v18 }
 0x23f   :  { %1600 = vmax.xlane.f32.xlu0 %v1599_v28  ;;  %v1502_v31 = vpop.f32.mrf.mxu1  ;;  %v4130_v35 = vpop.f32.mrf.mxu0 }
 0x240   :  { %v1602_v36 = vsel %vm1556_vm10, %v5196_v53, -inf }
 0x241   :  { %v4125_v4 = vpop.f32.mrf.mxu1  ;;  %v1553_v38 = vpop.f32.mrf.mxu0  ;;  %1603 = vmax.xlane.f32.xlu1 %v1602_v36 }
 0x243   :  { %v4131_v39 = vpop.f32.mrf.mxu0 }
 0x290   :  { %v1559_v40 = vpop.xlane.xlu0 %1558 }
 0x291   :  { %v1605_v56 = vsub.f32 %v5097_v16, %v1559_v40 }
 0x293   :  { %v1621_v41 = vmul.f32 1.442695, %v1605_v56 }
 0x294   :  { %v1562_v44 = vpop.xlane.xlu0 %1561 }
 0x295   :  { %4340 = vpow2.f32 %v1621_v41  ;;  %v1606_v45 = vsub.f32 %v5104_v23, %v1562_v44 }
 0x297   :  { %v1623_v47 = vmul.f32 1.442695, %v1606_v45 }
 0x298   :  { %v1565_v55 = vpop.xlane.xlu1 %1564 }
 0x299   :  { %4342 = vpow2.f32 %v1623_v47  ;;  %v1607_v59 = vsub.f32 %v5111_v51, %v1565_v55 }
 0x29b   :  { %v1625_v61 = vmul.f32 1.442695, %v1607_v59 }
 0x29c   :  { %v1568_v62 = vpop.xlane.xlu1 %1567 }
 0x29d   :  { %4344 = vpow2.f32 %v1625_v61  ;;  %v1608_v34 = vsub.f32 %v5118_v43, %v1568_v62 }
 0x29f   :  { %v1627_v3 = vmul.f32 1.442695, %v1608_v34 }
 0x2a0   :  { %v1571_v6 = vpop.xlane.xlu0 %1570 }
 0x2a1   :  { %4346 = vpow2.f32 %v1627_v3  ;;  %v1609_v16 = vsub.f32 %v5125_v49, %v1571_v6 }
 0x2a2   :  { %v5205_v32 = vpop.eup %4340  ;;  %v1574_v9 = vpop.xlane.xlu1 %1573 }
 0x2a3   :  { %v1629_v7 = vmul.f32 1.442695, %v1609_v16  ;;  %v1653_v23 = vsel %vm1556_vm10, %v5205_v32, 0.0  ;;  %v1610_v11 = vsub.f32 %v5132_v8, %v1574_v9 }
 0x2a4   :  { %1654 = vadd.xlane.f32.xlu0 %v1653_v23 }
 0x2a5   :  { %4348 = vpow2.f32 %v1629_v7  ;;  %v1631_v12 = vmul.f32 1.442695, %v1610_v11 }
 0x2a6   :  { %v5210_v51 = vpop.eup %4342 }
 0x2a7   :  { %v1656_v43 = vsel %vm1556_vm10, %v5210_v51, 0.0  ;;  %4350 = vpow2.f32 %v1631_v12 }
 0x2a8   :  { %1657 = vadd.xlane.f32.xlu1 %v1656_v43  ;;  %v1577_v49 = vpop.xlane.xlu0 %1576 }
 0x2a9   :  { %v1611_v17 = vsub.f32 %v5139_v29, %v1577_v49 }
 0x2aa   :  { %v5215_v18 = vpop.eup %4344  ;;  %v1580_v25 = vpop.xlane.xlu1 %1579 }
 0x2ab   :  { %v1633_v19 = vmul.f32 1.442695, %v1611_v17  ;;  %v1659_v8 = vsel %vm1556_vm10, %v5215_v18, 0.0  ;;  %v1612_v26 = vsub.f32 %v5146_v27, %v1580_v25 }
 0x2ac   :  { %1660 = vadd.xlane.f32.xlu0 %v1659_v8 }
 0x2ad   :  { %4352 = vpow2.f32 %v1633_v19  ;;  %v1635_v31 = vmul.f32 1.442695, %v1612_v26 }
 0x2ae   :  { %v5220_v28 = vpop.eup %4346 }
 0x2af   :  { %v1662_v35 = vsel %vm1556_vm10, %v5220_v28, 0.0  ;;  %4354 = vpow2.f32 %v1635_v31 }
 0x2b0   :  { %1663 = vadd.xlane.f32.xlu1 %v1662_v35  ;;  %v1583_v29 = vpop.xlane.xlu0 %1582 }
 0x2b1   :  { %v1613_v36 = vsub.f32 %v5153_v46, %v1583_v29 }
 0x2b2   :  { %v5225_v4 = vpop.eup %4348  ;;  %v1586_v39 = vpop.xlane.xlu1 %1585 }
 0x2b3   :  { %v1637_v38 = vmul.f32 1.442695, %v1613_v36  ;;  %v1665_v27 = vsel %vm1556_vm10, %v5225_v4, 0.0  ;;  %v1614_v40 = vsub.f32 %v5160_v1, %v1586_v39 }
 0x2b4   :  { %1666 = vadd.xlane.f32.xlu0 %v1665_v27  ;;  %v5230_v56 = vpop.eup %4350 }
 0x2b5   :  { %4356 = vpow2.f32 %v1637_v38  ;;  %v1639_v41 = vmul.f32 1.442695, %v1614_v40  ;;  %v1668_v44 = vsel %vm1556_vm10, %v5230_v56, 0.0 }
 0x2b6   :  { %1669 = vadd.xlane.f32.xlu1 %v1668_v44 }
 0x2b7   :  { %4358 = vpow2.f32 %v1639_v41 }
 0x2b8   :  { %v1589_v46 = vpop.xlane.xlu0 %1588 }
 0x2b9   :  { %v1615_v45 = vsub.f32 %v5167_v22, %v1589_v46 }
 0x2ba   :  { %v5235_v47 = vpop.eup %4352  ;;  %v1592_v59 = vpop.xlane.xlu1 %1591 }
 0x2bb   :  { %v1641_v55 = vmul.f32 1.442695, %v1615_v45  ;;  %v1671_v1 = vsel %vm1556_vm10, %v5235_v47, 0.0  ;;  %v1616_v61 = vsub.f32 %v5174_v33, %v1592_v59 }
 0x2bc   :  { %1672 = vadd.xlane.f32.xlu0 %v1671_v1  ;;  %v5240_v62 = vpop.eup %4354 }
 0x2bd   :  { %4360 = vpow2.f32 %v1641_v55  ;;  %v1643_v34 = vmul.f32 1.442695, %v1616_v61  ;;  %v1674_v3 = vsel %vm1556_vm10, %v5240_v62, 0.0 }
 0x2be   :  { %1675 = vadd.xlane.f32.xlu1 %v1674_v3 }
 0x2bf   :  { %4362 = vpow2.f32 %v1643_v34 }
 0x2c0   :  { %v1595_v22 = vpop.xlane.xlu0 %1594 }
 0x2c1   :  { %v1617_v6 = vsub.f32 %v5181_v52, %v1595_v22 }
 0x2c2   :  { %v5245_v16 = vpop.eup %4356  ;;  %v1598_v9 = vpop.xlane.xlu1 %1597 }
 0x2c3   :  { %v1645_v7 = vmul.f32 1.442695, %v1617_v6  ;;  %v1677_v33 = vsel %vm1556_vm10, %v5245_v16, 0.0  ;;  %v1618_v23 = vsub.f32 %v5188_v0, %v1598_v9 }
 0x2c4   :  { %1678 = vadd.xlane.f32.xlu0 %v1677_v33  ;;  %v5250_v11 = vpop.eup %4358 }
 0x2c5   :  { %4364 = vpow2.f32 %v1645_v7  ;;  %v1647_v12 = vmul.f32 1.442695, %v1618_v23  ;;  %v1680_v43 = vsel %vm1556_vm10, %v5250_v11, 0.0 }
 0x2c6   :  { %1681 = vadd.xlane.f32.xlu1 %v1680_v43 }
 0x2c7   :  { %4366 = vpow2.f32 %v1647_v12 }
 0x2c8   :  { %v1601_v52 = vpop.xlane.xlu0 %1600 }
 0x2c9   :  { %v1619_v49 = vsub.f32 %v5192_v20, %v1601_v52 }
 0x2ca   :  { %v5255_v17 = vpop.eup %4360  ;;  %v1604_v25 = vpop.xlane.xlu1 %1603 }
 0x2cb   :  { %v1649_v19 = vmul.f32 1.442695, %v1619_v49  ;;  %v1683_v0 = vsel %vm1556_vm10, %v5255_v17, 0.0  ;;  %v1620_v8 = vsub.f32 %v5196_v53, %v1604_v25 }
 0x2cc   :  { %1684 = vadd.xlane.f32.xlu0 %v1683_v0  ;;  %v5260_v26 = vpop.eup %4362 }
 0x2cd   :  { %4368 = vpow2.f32 %v1649_v19  ;;  %v1651_v31 = vmul.f32 1.442695, %v1620_v8  ;;  %v1686_v35 = vsel %vm1556_vm10, %v5260_v26, 0.0 }
 0x2ce   :  { %1687 = vadd.xlane.f32.xlu1 %v1686_v35 }
 0x2cf   :  { %4370 = vpow2.f32 %v1651_v31 }
 0x2d2   :  { %v5264_v20 = vpop.eup %4364 }
 0x2d3   :  { %v1689_v29 = vsel %vm1556_vm10, %v5264_v20, 0.0 }
 0x2d4   :  { %1690 = vadd.xlane.f32.xlu0 %v1689_v29  ;;  %v5268_v36 = vpop.eup %4366 }
 0x2d5   :  { %v1692_v53 = vsel %vm1556_vm10, %v5268_v36, 0.0 }
 0x2d6   :  { %1693 = vadd.xlane.f32.xlu1 %v1692_v53 }
 0x2da   :  { %v5272_v38 = vpop.eup %4368 }
 0x2db   :  { %v1695_v39 = vsel %vm1556_vm10, %v5272_v38, 0.0 }
 0x2dc   :  { %1696 = vadd.xlane.f32.xlu0 %v1695_v39  ;;  %v5276_v27 = vpop.eup %4370 }
 0x2dd   :  { %v1698_v40 = vsel %vm1556_vm10, %v5276_v27, 0.0 }
 0x2de   :  { %1699 = vadd.xlane.f32.xlu1 %v1698_v40 }
 0x32d   :  { %v1655_v41 = vpop.xlane.xlu0 %1654 }
 0x32e   :  { %4372 = vrcp.f32 %v1655_v41 }
 0x331   :  { %v1658_v44 = vpop.xlane.xlu1 %1657 }
 0x332   :  { %4374 = vrcp.f32 %v1658_v44 }
 0x335   :  { %v1661_v46 = vpop.xlane.xlu0 %1660 }
 0x336   :  { %4376 = vrcp.f32 %v1661_v46 }
 0x339   :  { %v1664_v45 = vpop.xlane.xlu1 %1663 }
 0x33a   :  { %4378 = vrcp.f32 %v1664_v45 }
 0x33b   :  { %v4373_v55 = vpop.eup %4372 }
 0x33c   :  { %v1717_v59 = vmul.f32 %v4373_v55, %v5205_v32 }
 0x33d   :  { %v1667_v1 = vpop.xlane.xlu0 %1666 }
 0x33e   :  { %4380 = vrcp.f32 %v1667_v1  ;;  %v1733_v61 = vpack.c.bf16 %v1717_v59, %v1717_v59 }
 0x33f   :  { %v4375_v34 = vpop.eup %4374  ;;  %v1670_v3 = vpop.xlane.xlu1 %1669 }
 0x340   :  { %4135 = vmatmul.mubr.msk.bf16.vlgmr.msra.gmra.mxu1 %vm1749_vm11, %v1733_v61  ;;  %v1718_v22 = vmul.f32 %v4375_v34, %v5210_v51  ;;  %4382 = vrcp.f32 %v1670_v3 }
 0x341   :  { %4145 = vmatpush3.bf16.msra.mxu1 %v4955_v48  ;;  %4146 = vmatprep.mubr.msk.bf16.mxu1 %vm4599_vm8, %v4598_v15 }
 0x342   :  { %v1734_v6 = vpack.c.bf16 %v1718_v22, %v1718_v22  ;;  %4156 = vmatprep.subr.bf16.mxu1 %v4598_v15 }
 0x343   :  { %v4377_v32 = vpop.eup %4376 }
 0x344   :  { %4141 = vmatmul.mubr.msk.bf16.vlgmr.msra.gmra.mxu0 %vm1749_vm11, %v1734_v6  ;;  %v1719_v7 = vmul.f32 %v4377_v32, %v5215_v18 }
 0x345   :  { %4151 = vmatpush3.bf16.msra.mxu0 %v4972_v30  ;;  %v1673_v9 = vpop.xlane.xlu0 %1672  ;;  %4152 = vmatprep.mubr.msk.bf16.mxu0 %vm4599_vm8, %v4598_v15 }
 0x346   :  { %4384 = vrcp.f32 %v1673_v9  ;;  %v1735_v51 = vpack.c.bf16 %v1719_v7, %v1719_v7  ;;  %4162 = vmatprep.subr.bf16.mxu0 %v4598_v15 }
 0x347   :  { %v4379_v48 = vpop.eup %4378  ;;  %v1676_v33 = vpop.xlane.xlu1 %1675 }
 0x348   :  { %4147 = vmatmul.mubr.msk.bf16.vlgmr.msra.gmra.mxu1 %vm1749_vm11, %v1735_v51  ;;  %v1720_v23 = vmul.f32 %v4379_v48, %v5220_v28  ;;  %4386 = vrcp.f32 %v1676_v33 }
 0x349   :  { %4157 = vmatpush3.bf16.msra.mxu1 %v4998_v58  ;;  %4158 = vmatprep.mubr.msk.bf16.mxu1 %vm4599_vm8, %v4598_v15 }
 0x34a   :  { %v1736_v30 = vpack.c.bf16 %v1720_v23, %v1720_v23  ;;  %4168 = vmatprep.subr.bf16.mxu1 %v4598_v15 }
 0x34b   :  { %v4381_v18 = vpop.eup %4380 }
 0x34c   :  { %4153 = vmatmul.mubr.msk.bf16.vlgmr.msra.gmra.mxu0 %vm1749_vm11, %v1736_v30  ;;  %v1721_v12 = vmul.f32 %v4381_v18, %v5225_v4 }
 0x34d   :  { %4163 = vmatpush3.bf16.msra.mxu0 %v5012_v5  ;;  %v1679_v43 = vpop.xlane.xlu0 %1678  ;;  %4164 = vmatprep.mubr.msk.bf16.mxu0 %vm4599_vm8, %v4598_v15  ;;  %v4383_v28 = vpop.eup %4382 }
 0x34e   :  { %4388 = vrcp.f32 %v1679_v43  ;;  %v1737_v58 = vpack.c.bf16 %v1721_v12, %v1721_v12  ;;  %4174 = vmatprep.subr.bf16.mxu0 %v4598_v15  ;;  %v1722_v52 = vmul.f32 %v4383_v28, %v5230_v56 }
 0x34f   :  { %v1682_v49 = vpop.xlane.xlu1 %1681 }
 0x350   :  { %4159 = vmatmul.mubr.msk.bf16.vlgmr.msra.gmra.mxu1 %vm1749_vm11, %v1737_v58  ;;  %4390 = vrcp.f32 %v1682_v49  ;;  %v1738_v5 = vpack.c.bf16 %v1722_v52, %v1722_v52 }
 0x351   :  { %4169 = vmatpush3.bf16.msra.mxu1 %v4988_v54  ;;  %4170 = vmatprep.mubr.msk.bf16.mxu1 %vm4599_vm8, %v4598_v15 }
 0x352   :  { %4180 = vmatprep.subr.bf16.mxu1 %v4598_v15 }
 0x353   :  { %v4385_v4 = vpop.eup %4384 }
 0x354   :  { %4165 = vmatmul.mubr.msk.bf16.vlgmr.msra.gmra.mxu0 %vm1749_vm11, %v1738_v5  ;;  %v1723_v19 = vmul.f32 %v4385_v4, %v5235_v47 }
 0x355   :  { %4175 = vmatpush3.bf16.msra.mxu0 %v5006_v63  ;;  %v1685_v56 = vpop.xlane.xlu0 %1684  ;;  %4176 = vmatprep.mubr.msk.bf16.mxu0 %vm4599_vm8, %v4598_v15  ;;  %v4387_v25 = vpop.eup %4386 }
 0x356   :  { %4392 = vrcp.f32 %v1685_v56  ;;  %v1739_v54 = vpack.c.bf16 %v1723_v19, %v1723_v19  ;;  %4186 = vmatprep.subr.bf16.mxu0 %v4598_v15  ;;  %v1724_v0 = vmul.f32 %v4387_v25, %v5240_v62 }
 0x357   :  { %v1688_v8 = vpop.xlane.xlu1 %1687 }
 0x358   :  { %4171 = vmatmul.mubr.msk.bf16.vlgmr.msra.gmra.mxu1 %vm1749_vm11, %v1739_v54  ;;  %4394 = vrcp.f32 %v1688_v8  ;;  %v1740_v63 = vpack.c.bf16 %v1724_v0, %v1724_v0 }
 0x359   :  { %4181 = vmatpush3.bf16.msra.mxu1 %v5030_v21  ;;  %4182 = vmatprep.mubr.msk.bf16.mxu1 %vm4599_vm8, %v4598_v15 }
 0x35a   :  { %4192 = vmatprep.subr.bf16.mxu1 %v4598_v15 }
 0x35b   :  { %v4389_v47 = vpop.eup %4388 }
 0x35c   :  { %4177 = vmatmul.mubr.msk.bf16.vlgmr.msra.gmra.mxu0 %vm1749_vm11, %v1740_v63  ;;  %v1725_v31 = vmul.f32 %v4389_v47, %v5245_v16 }
 0x35d   :  { %4187 = vmatpush3.bf16.msra.mxu0 %v5048_v37  ;;  %v1691_v62 = vpop.xlane.xlu0 %1690  ;;  %4188 = vmatprep.mubr.msk.bf16.mxu0 %vm4599_vm8, %v4598_v15  ;;  %v4391_v35 = vpop.eup %4390 }
 0x35e   :  { %4396 = vrcp.f32 %v1691_v62  ;;  %v1741_v21 = vpack.c.bf16 %v1725_v31, %v1725_v31  ;;  %4198 = vmatprep.subr.bf16.mxu0 %v4598_v15  ;;  %v1726_v29 = vmul.f32 %v4391_v35, %v5250_v11 }
 0x35f   :  { %v1694_v53 = vpop.xlane.xlu1 %1693 }
 0x360   :  { %4183 = vmatmul.mubr.msk.bf16.vlgmr.msra.gmra.mxu1 %vm1749_vm11, %v1741_v21  ;;  %4398 = vrcp.f32 %v1694_v53  ;;  %v1742_v37 = vpack.c.bf16 %v1726_v29, %v1726_v29 }
 0x361   :  { %4193 = vmatpush3.bf16.msra.mxu1 %v5020_v13  ;;  %4194 = vmatprep.mubr.msk.bf16.mxu1 %vm4599_vm8, %v4598_v15 }
 0x362   :  { %4204 = vmatprep.subr.bf16.mxu1 %v4598_v15 }
 0x363   :  { %v4393_v16 = vpop.eup %4392 }
 0x364   :  { %4189 = vmatmul.mubr.msk.bf16.vlgmr.msra.gmra.mxu0 %vm1749_vm11, %v1742_v37  ;;  %v1727_v39 = vmul.f32 %v4393_v16, %v5255_v17 }
 0x365   :  { %4199 = vmatpush3.bf16.msra.mxu0 %v5040_v50  ;;  %v1697_v11 = vpop.xlane.xlu0 %1696  ;;  %4200 = vmatprep.mubr.msk.bf16.mxu0 %vm4599_vm8, %v4598_v15  ;;  %v4395_v40 = vpop.eup %4394 }
 0x366   :  { %4400 = vrcp.f32 %v1697_v11  ;;  %v1743_v13 = vpack.c.bf16 %v1727_v39, %v1727_v39  ;;  %4210 = vmatprep.subr.bf16.mxu0 %v4598_v15  ;;  %v1728_v41 = vmul.f32 %v4395_v40, %v5260_v26 }
 0x367   :  { %v1700_v44 = vpop.xlane.xlu1 %1699 }
 0x368   :  { %4195 = vmatmul.mubr.msk.bf16.vlgmr.msra.gmra.mxu1 %vm1749_vm11, %v1743_v13  ;;  %4402 = vrcp.f32 %v1700_v44  ;;  %v1744_v50 = vpack.c.bf16 %v1728_v41, %v1728_v41 }
 0x369   :  { %4205 = vmatpush3.bf16.msra.mxu1 %v5066_v24  ;;  %4206 = vmatprep.mubr.msk.bf16.mxu1 %vm4599_vm8, %v4598_v15 }
 0x36a   :  { %4216 = vmatprep.subr.bf16.mxu1 %v4598_v15 }
 0x36b   :  { %v4397_v17 = vpop.eup %4396 }
 0x36c   :  { %4201 = vmatmul.mubr.msk.bf16.vlgmr.msra.gmra.mxu0 %vm1749_vm11, %v1744_v50  ;;  %v1729_v46 = vmul.f32 %v4397_v17, %v5264_v20 }
 0x36d   :  { %4211 = vmatpush3.bf16.msra.mxu0 %v5077_v2  ;;  %4212 = vmatprep.mubr.msk.bf16.mxu0 %vm4599_vm8, %v4598_v15  ;;  %v4399_v26 = vpop.eup %4398 }
 0x36e   :  { %v1745_v45 = vpack.c.bf16 %v1729_v46, %v1729_v46  ;;  %4222 = vmatprep.subr.bf16.mxu0 %v4598_v15  ;;  %v1730_v24 = vmul.f32 %v4399_v26, %v5268_v36 }
 0x370   :  { %4207 = vmatmul.mubr.msk.bf16.vlgmr.msra.gmra.mxu1 %vm1749_vm11, %v1745_v45  ;;  %v1746_v55 = vpack.c.bf16 %v1730_v24, %v1730_v24 }
 0x371   :  { %4217 = vmatpush3.bf16.msra.mxu1 %v5058_v42  ;;  %4218 = vmatprep.mubr.msk.bf16.mxu1 %vm4599_vm8, %v4598_v15 }
 0x372   :  { %4228 = vmatprep.subr.bf16.mxu1 %v4598_v15 }
 0x373   :  { %v4401_v2 = vpop.eup %4400 }
 0x374   :  { %4213 = vmatmul.mubr.msk.bf16.vlgmr.msra.gmra.mxu0 %vm1749_vm11, %v1746_v55  ;;  %v1731_v20 = vmul.f32 %v4401_v2, %v5272_v38  ;;  %v4325_v38 = vld [vmem:[%s6015_s5] sm:$0xff]  }
 0x375   :  { %4223 = vmatpush3.bf16.msra.mxu0 %v5073_v60  ;;  %4224 = vmatprep.mubr.msk.bf16.mxu0 %vm4599_vm8, %v4598_v15  ;;  %v4403_v36 = vpop.eup %4402  ;;  %v4324_v60 = vld [vmem:[%s6015_s5 + $0x8] sm:$0xff]  }
 0x376   :  { %v1747_v59 = vpack.c.bf16 %v1731_v20, %v1731_v20  ;;  %4236 = vmatprep.subr.bf16.mxu0 %v4598_v15  ;;  %v1732_v42 = vmul.f32 %v4403_v36, %v5276_v27 }
 0x378   :  { %4219 = vmatmul.mubr.msk.bf16.vlgmr.msra.gmra.mxu1 %vm1749_vm11, %v1747_v59  ;;  %v1748_v1 = vpack.c.bf16 %v1732_v42, %v1732_v42 }
 0x379   :  { %4232 = vmatprep.mubr.msk.bf16.mxu1 %vm4599_vm8, %v4598_v15  ;;  %4229 = vmatpush3.bf16.msra.mxu1 %v4324_v60 }
 0x37a   :  { %4230 = vmatprep.subr.bf16.mxu1 %v4598_v15 }
 0x37c   :  { %4225 = vmatmul.mubr.msk.bf16.vlgmr.msra.gmra.mxu0 %vm1749_vm11, %v1748_v1 }
 0x37d   :  { %4240 = vmatprep.mubr.msk.bf16.mxu0 %vm4599_vm8, %v4598_v15  ;;  %4231 = vmatpush3.bf16.msra.mxu1 %v4325_v38 }
 0x37e   :  { %4244 = vmatprep.subr.bf16.mxu1 %v4598_v15 }
 0x400   :  { %v5380_v27 = vpop.f32.mrf.mxu1 }
 0x401   :  { %v2487_v42 = vpack.c.bf16 %v5380_v27, %v5380_v27 }
 0x402   :  { %v4136_v61 = vpop.f32.mrf.mxu1 }
 0x404   :  { %v1794_v34 = vpop.f32.mrf.mxu1  ;;  %v1837_v3 = vpop.f32.mrf.mxu0 }
 0x405   :  { %v2488_v17 = vpack.c.bf16 %v1837_v3, %v1837_v3 }
 0x406   :  { %v4137_v22 = vpop.f32.mrf.mxu1  ;;  %v4142_v6 = vpop.f32.mrf.mxu0 }
 0x407   :  { %v2528_v1 = vunpack.c.l.b16 %v2488_v17 }
 0x408   :  { %v1840_v32 = vpop.f32.mrf.mxu0  ;;  %v1883_v7 = vpop.f32.mrf.mxu1 }
 0x409   :  { %v2489_v24 = vpack.c.bf16 %v1883_v7, %v1883_v7 }
 0x40a   :  { %v4143_v9 = vpop.f32.mrf.mxu0  ;;  %v4148_v51 = vpop.f32.mrf.mxu1 }
 0x40b   :  { %v2529_v32 = vunpack.c.l.b16 %v2489_v24 }
 0x40c   :  { %v1886_v48 = vpop.f32.mrf.mxu1  ;;  %v1929_v33 = vpop.f32.mrf.mxu0 }
 0x40d   :  { %v2490_v55 = vpack.c.bf16 %v1929_v33, %v1929_v33 }
 0x40e   :  { %v4149_v23 = vpop.f32.mrf.mxu1  ;;  %v4154_v30 = vpop.f32.mrf.mxu0 }
 0x40f   :  { %v2530_v9 = vunpack.c.l.b16 %v2490_v55 }
 0x410   :  { %v1932_v18 = vpop.f32.mrf.mxu0  ;;  %v1975_v12 = vpop.f32.mrf.mxu1 }
 0x411   :  { %v2491_v60 = vpack.c.bf16 %v1975_v12, %v1975_v12  ;;  %v2527_v18 = vunpack.c.l.b16 %v2487_v42  ;;  %v2543_v12 = vrot.slane %v2528_v1, 7 }
 0x412   :  { %v4155_v43 = vpop.f32.mrf.mxu0  ;;  %v4160_v28 = vpop.f32.mrf.mxu1 }
 0x413   :  { %v2531_v43 = vunpack.c.l.b16 %v2491_v60 }
 0x414   :  { %v1978_v58 = vpop.f32.mrf.mxu1  ;;  %v2021_v52 = vpop.f32.mrf.mxu0 }
 0x415   :  { %v2492_v22 = vpack.c.bf16 %v2021_v52, %v2021_v52 }
 0x416   :  { %v4161_v49 = vpop.f32.mrf.mxu1  ;;  %v4166_v5 = vpop.f32.mrf.mxu0 }
 0x417   :  { %v2532_v49 = vunpack.c.l.b16 %v2492_v22 }
 0x418   :  { %v2024_v4 = vpop.f32.mrf.mxu0  ;;  %v5382_v19 = vpop.f32.mrf.mxu1 }
 0x419   :  { %v2493_v7 = vpack.c.bf16 %v5382_v19, %v5382_v19  ;;  %v2547_v19 = vrot.slane %v2530_v9, 5  ;;  %v5410_v9 = vld [vmem:[#allocation11] sm:$0xff] }
 0x41a   :  { %v4167_v56 = vpop.f32.mrf.mxu0  ;;  %v4172_v25 = vpop.f32.mrf.mxu1 }
 0x41b   :  { %v2545_v25 = vrot.slane %v2529_v32, 6  ;;  %v2509_v32 = vsub.s32 3, %v4834_v10 }
 0x41c   :  { %v2070_v54 = vpop.f32.mrf.mxu1  ;;  %v5384_v0 = vpop.f32.mrf.mxu0 }
 0x41d   :  { %v2494_v23 = vpack.c.bf16 %v5384_v0, %v5384_v0  ;;  %v2533_v54 = vunpack.c.l.b16 %v2493_v7  ;;  %v2510_v7 = vrot.slane %v5410_v9, %v2509_v32 }
 0x41e   :  { %v4173_v8 = vpop.f32.mrf.mxu1  ;;  %v4178_v63 = vpop.f32.mrf.mxu0 }
 0x420   :  { %v2116_v47 = vpop.f32.mrf.mxu0  ;;  %v2159_v31 = vpop.f32.mrf.mxu1 }
 0x421   :  { %v2495_v27 = vpack.c.bf16 %v2159_v31, %v2159_v31 }
 0x422   :  { %v4179_v62 = vpop.f32.mrf.mxu0  ;;  %v4184_v35 = vpop.f32.mrf.mxu1 }
 0x423   :  { %v2534_v62 = vunpack.c.l.b16 %v2494_v23  ;;  %v2535_v0 = vunpack.c.l.b16 %v2495_v27  ;;  %v4423_v27 = vld [vmem:[%s6010_s0 + $0x8] sm:$0xf] }
 0x424   :  { %v2162_v21 = vpop.f32.mrf.mxu1  ;;  %v2205_v29 = vpop.f32.mrf.mxu0 }
 0x425   :  { %v2496_v45 = vpack.c.bf16 %v2205_v29, %v2205_v29  ;;  %v2544_v21 = vsel %vm550_vm1, %v2543_v12, %v2527_v18  ;;  %v2549_v29 = vrot.slane %v2531_v43, 4  ;;  %v2555_v24 = vrot.slane %v2534_v62, 1  ;;  %v4424_v18 = vld [vmem:[%s6010_s0 + $0xc] sm:$0xf]  ;;  %v4425_v43 = vld [vmem:[%s6010_s0 + $0x10] sm:$0xf] }
 0x426   :  { %v4185_v53 = vpop.f32.mrf.mxu1  ;;  %v4190_v37 = vpop.f32.mrf.mxu0  ;;  %v165_v12 = vunpack.c.l.bf16 %v4424_v18 }
 0x427   :  { %v2536_v6 = vunpack.c.l.b16 %v2496_v45 }
 0x428   :  { %v2208_v16 = vpop.f32.mrf.mxu0  ;;  %v2251_v39 = vpop.f32.mrf.mxu1 }
 0x429   :  { %v2497_v2 = vpack.c.bf16 %v2251_v39, %v2251_v39  ;;  %v2557_v5 = vrot.slane %v2536_v6, 7  ;;  %v2551_v39 = vrot.slane %v2532_v49, 3  ;;  %v4427_v49 = vld [vmem:[%s6010_s0 + $0x18] sm:$0xf] }
 0x42a   :  { %v4191_v11 = vpop.f32.mrf.mxu0  ;;  %v4196_v40 = vpop.f32.mrf.mxu1 }
 0x42b   :  { %v2537_v51 = vunpack.c.l.b16 %v2497_v2  ;;  %v2558_v11 = vsel %vm550_vm1, %v2557_v5, %v2535_v0  ;;  %v168_v5 = vunpack.c.l.bf16 %v4427_v49  ;;  %v4432_v0 = vld [vmem:[%s6010_s0 + $0x2c] sm:$0xf] }
 0x42c   :  { %v2254_v13 = vpop.f32.mrf.mxu1  ;;  %v2297_v41 = vpop.f32.mrf.mxu0 }
 0x42d   :  { %v2498_v59 = vpack.c.bf16 %v2297_v41, %v2297_v41  ;;  %v2559_v8 = vrot.slane %v2537_v51, 6  ;;  %v2546_v41 = vsel %vm553_vm2, %v2545_v25, %v2544_v21  ;;  %v4421_v51 = vld [vmem:[%s6010_s0] sm:$0xf]  ;;  %v4433_v21 = vld [vmem:[%s6010_s0 + $0x30] sm:$0xf] }
 0x42e   :  { %v4197_v44 = vpop.f32.mrf.mxu1  ;;  %v4202_v50 = vpop.f32.mrf.mxu0  ;;  %v2548_v45 = vsel %vm556_vm3, %v2547_v19, %v2546_v41  ;;  %v4429_v25 = vld [vmem:[%s6010_s0 + $0x20] sm:$0xf] }
 0x42f   :  { %v2538_v30 = vunpack.c.l.b16 %v2498_v59  ;;  %v2553_v44 = vrot.slane %v2533_v54, 2  ;;  %v2560_v50 = vsel %vm553_vm2, %v2559_v8, %v2558_v11  ;;  %v170_v19 = vunpack.c.l.bf16 %v4429_v25  ;;  %v4430_v8 = vld [vmem:[%s6010_s0 + $0x24] sm:$0xf]  ;;  %v4436_v11 = vld [vmem:[%s6010_s0 + $0x3c] sm:$0xf] }
 0x430   :  { %v2300_v46 = vpop.f32.mrf.mxu0  ;;  %v2343_v26 = vpop.f32.mrf.mxu1 }
 0x431   :  { %v2499_v38 = vpack.c.bf16 %v2343_v26, %v2343_v26  ;;  %v2561_v31 = vrot.slane %v2538_v30, 5  ;;  %v164_v30 = vunpack.c.l.bf16 %v4423_v27 }
 0x432   :  { %v4203_v20 = vpop.f32.mrf.mxu0  ;;  %v4208_v36 = vpop.f32.mrf.mxu1 }
 0x433   :  { %v2539_v28 = vunpack.c.l.b16 %v2499_v38  ;;  %v2562_v55 = vsel %vm556_vm3, %v2561_v31, %v2560_v50  ;;  %v2550_v20 = vsel %vm559_vm4, %v2549_v29, %v2548_v45  ;;  %v173_v31 = vunpack.c.l.bf16 %v4432_v0 }
 0x434   :  { %v2346_v61 = vpop.f32.mrf.mxu1  ;;  %v2389_v34 = vpop.f32.mrf.mxu0  ;;  %v2552_v42 = vsel %vm562_vm5, %v2551_v39, %v2550_v20  ;;  %v174_v29 = vunpack.c.l.bf16 %v4433_v21 }
 0x435   :  { %v2500_v3 = vpack.c.bf16 %v2389_v34, %v2389_v34  ;;  %v2563_v53 = vrot.slane %v2539_v28, 4  ;;  %v2554_v38 = vsel %vm565_vm6, %v2553_v44, %v2552_v42  ;;  %v166_v28 = vunpack.c.l.bf16 %v4425_v43 }
 0x436   :  { %v4209_v48 = vpop.f32.mrf.mxu1  ;;  %v4214_v33 = vpop.f32.mrf.mxu0  ;;  %v2556_v22 = vsel %vm568_vm7, %v2555_v24, %v2554_v38 }
 0x437   :  { %v2540_v4 = vunpack.c.l.b16 %v2500_v3  ;;  %v2564_v36 = vsel %vm559_vm4, %v2563_v53, %v2562_v55  ;;  %v162_v48 = vunpack.c.l.bf16 %v4421_v51  ;;  %v4422_v33 = vld [vmem:[%s6010_s0 + $0x4] sm:$0xf]  ;;  %v4434_v53 = vld [vmem:[%s6010_s0 + $0x34] sm:$0xf] }
 0x438   :  { %v2392_v58 = vpop.f32.mrf.mxu0  ;;  %v2435_v52 = vpop.f32.mrf.mxu1  ;;  %v163_v23 = vunpack.c.l.bf16 %v4422_v33 }
 0x439   :  { %v2501_v56 = vpack.c.bf16 %v2435_v52, %v2435_v52  ;;  %v2565_v40 = vrot.slane %v2540_v4, 3  ;;  %v4426_v58 = vld [vmem:[%s6010_s0 + $0x14] sm:$0xf]  ;;  %v4428_v4 = vld [vmem:[%s6010_s0 + $0x1c] sm:$0xf] }
 0x43a   :  { %v4215_v63 = vpop.f32.mrf.mxu0  ;;  %v4220_v47 = vpop.f32.mrf.mxu1  ;;  %v167_v52 = vunpack.c.l.bf16 %v4426_v58 }
 0x43b   :  { %v2541_v35 = vunpack.c.l.b16 %v2501_v56  ;;  %v2566_v1 = vsel %vm562_vm5, %v2565_v40, %v2564_v36  ;;  %v169_v56 = vunpack.c.l.bf16 %v4428_v4  ;;  %v171_v63 = vunpack.c.l.bf16 %v4430_v8  ;;  %v4431_v47 = vld [vmem:[%s6010_s0 + $0x28] sm:$0xf] }
 0x43c   :  { %v2438_v37 = vpop.f32.mrf.mxu1  ;;  %v2481_v16 = vpop.f32.mrf.mxu0  ;;  %v172_v62 = vunpack.c.l.bf16 %v4431_v47  ;;  %v177_v40 = vunpack.c.l.bf16 %v4436_v11 }
 0x43d   :  { %v2502_v13 = vpack.c.bf16 %v2481_v16, %v2481_v16  ;;  %v2567_v17 = vrot.slane %v2541_v35, 2  ;;  %v175_v37 = vunpack.c.l.bf16 %v4434_v53  ;;  %v4435_v16 = vld [vmem:[%s6010_s0 + $0x38] sm:$0xf] }
 0x43e   :  { %v4221_v46 = vpop.f32.mrf.mxu1  ;;  %v4226_v26 = vpop.f32.mrf.mxu0  ;;  %v176_v39 = vunpack.c.l.bf16 %v4435_v16 }
 0x43f   :  { %v2542_v2 = vunpack.c.l.b16 %v2502_v13  ;;  %v2568_v61 = vsel %vm565_vm6, %v2567_v17, %v2566_v1 }
 0x440   :  { %v2484_v59 = vpop.f32.mrf.mxu0 }
 0x441   :  { %v2569_v60 = vrot.slane %v2542_v2, 1 }
 0x442   :  { %v4227_v34 = vpop.f32.mrf.mxu0 }
 0x443   :  { %v2570_v6 = vsel %vm568_vm7, %v2569_v60, %v2568_v61 }
 0x444   :  { %v2571_v3 = vpack.c.b16 %v2570_v6, %v2556_v22 }
 0x446   :  { %4233 = vmatmul.mubr.msk.bf16.vlgmr.msra.gmra.mxu1 %vm206_vm0, %v2571_v3 }
 0x447   :  { %4260 = vmatprep.mubr.msk.bf16.mxu1 %vm4599_vm8, %v4598_v15 }
 0x506   :  { %v2621_v54 = vpop.f32.mrf.mxu1 }
 0x507   :  { %v2622_v35 = vadd.f32 %v2621_v54, %v2510_v7 }
 0x508   :  { %v4234_v13 = vpop.f32.mrf.mxu1 }
 0x509   :  { %v2630_v41 = vrot.slane %v2622_v35, 1  ;;  %v2631_v44 = vrot.slane %v2622_v35, 2  ;;  %v2632_v50 = vrot.slane %v2622_v35, 3  ;;  %v2633_v17 = vrot.slane %v2622_v35, 4 }
 0x50a   :  { %v2624_v46 = vpop.f32.mrf.mxu1  ;;  %v2634_v26 = vrot.slane %v2622_v35, 5  ;;  %v2635_v45 = vrot.slane %v2622_v35, 6  ;;  %v2636_v24 = vrot.slane %v2622_v35, 7  ;;  %v5461_v55 = vadd.f32 %v2622_v35, %v162_v48 }
 0x50b   :  { %v2625_v2 = vadd.f32 %v2624_v46, %v2510_v7  ;;  %v5463_v20 = vadd.f32 %v2630_v41, %v163_v23  ;;  %v5465_v36 = vadd.f32 %v2631_v44, %v164_v30  ;;  %v5467_v59 = vadd.f32 %v2632_v50, %v165_v12 }
 0x50c   :  { %v4235_v42 = vpop.f32.mrf.mxu1  ;;  %v5469_v1 = vadd.f32 %v2633_v17, %v166_v28  ;;  %v5471_v60 = vadd.f32 %v2634_v26, %v167_v52  ;;  %v5473_v38 = vadd.f32 %v2635_v45, %v168_v5  ;;  %v5475_v61 = vadd.f32 %v2636_v24, %v169_v56 }
 0x50d   :  { %v2692_v34 = vrot.slane %v5463_v20, 7  ;;  %v2694_v22 = vrot.slane %v5465_v36, 6  ;;  %v2696_v6 = vrot.slane %v5467_v59, 5  ;;  %v2637_v3 = vrot.slane %v2625_v2, 1 }
 0x50e   :  { %v2698_v32 = vrot.slane %v5469_v1, 4  ;;  %v2700_v7 = vrot.slane %v5471_v60, 3  ;;  %v2702_v51 = vrot.slane %v5473_v38, 2  ;;  %v2704_v48 = vrot.slane %v5475_v61, 1 }
 0x50f   :  { %v2693_v33 = vsel %vm550_vm1, %v2692_v34, %v5461_v55  ;;  %v2638_v23 = vrot.slane %v2625_v2, 2  ;;  %v2639_v27 = vrot.slane %v2625_v2, 3  ;;  %v2640_v30 = vrot.slane %v2625_v2, 4 }
 0x510   :  { %v2695_v18 = vsel %vm553_vm2, %v2694_v22, %v2693_v33  ;;  %v2641_v12 = vrot.slane %v2625_v2, 5  ;;  %v2642_v43 = vrot.slane %v2625_v2, 6  ;;  %v2643_v28 = vrot.slane %v2625_v2, 7 }
 0x511   :  { %v2697_v58 = vsel %vm556_vm3, %v2696_v6, %v2695_v18  ;;  %v5488_v52 = vadd.f32 %v2625_v2, %v170_v19  ;;  %v5490_v49 = vadd.f32 %v2637_v3, %v171_v63  ;;  %v5492_v5 = vadd.f32 %v2638_v23, %v172_v62 }
 0x512   :  { %v2699_v4 = vsel %vm559_vm4, %v2698_v32, %v2697_v58  ;;  %v5495_v56 = vadd.f32 %v2639_v27, %v173_v31  ;;  %v5497_v25 = vadd.f32 %v2640_v30, %v174_v29  ;;  %v5499_v54 = vadd.f32 %v2641_v12, %v175_v37 }
 0x513   :  { %v2701_v8 = vsel %vm562_vm5, %v2700_v7, %v2699_v4  ;;  %v5502_v47 = vadd.f32 %v2642_v43, %v176_v39  ;;  %v5504_v0 = vadd.f32 %v2643_v28, %v177_v40  ;;  %v2706_v19 = vrot.slane %v5490_v49, 7 }
 0x514   :  { %v2703_v63 = vsel %vm565_vm6, %v2702_v51, %v2701_v8  ;;  %v2708_v62 = vrot.slane %v5492_v5, 6  ;;  %v2710_v35 = vrot.slane %v5495_v56, 5  ;;  %v2712_v29 = vrot.slane %v5497_v25, 4 }
 0x515   :  { %v2705_v31 = vsel %vm568_vm7, %v2704_v48, %v2703_v63  ;;  %v2707_v21 = vsel %vm550_vm1, %v2706_v19, %v5488_v52  ;;  %v2714_v53 = vrot.slane %v5499_v54, 3  ;;  %v2716_v39 = vrot.slane %v5502_v47, 2 }
 0x516   :  { %v2722_v37 = vsel %vm206_vm0, %v2705_v31, 0.0  ;;  %v2709_v16 = vsel %vm553_vm2, %v2708_v62, %v2707_v21  ;;  %v2718_v11 = vrot.slane %v5504_v0, 1  ;;  %v2732_v13 = vmul.f32 %v5463_v20, %v5463_v20 }
 0x517   :  { %2723 = vadd.xlane.f32.xlu0 %v2722_v37  ;;  %v2711_v40 = vsel %vm556_vm3, %v2710_v35, %v2709_v16  ;;  %v2733_v41 = vmul.f32 %v5465_v36, %v5465_v36  ;;  %v2734_v44 = vmul.f32 %v5467_v59, %v5467_v59  ;;  %v2731_v17 = vmul.f32 %v5461_v55, %v5461_v55 }
 0x518   :  { %v2713_v50 = vsel %vm559_vm4, %v2712_v29, %v2711_v40  ;;  %v2735_v46 = vmul.f32 %v5469_v1, %v5469_v1  ;;  %v2736_v26 = vmul.f32 %v5471_v60, %v5471_v60  ;;  %v2737_v24 = vmul.f32 %v5473_v38, %v5473_v38 }
 0x519   :  { %v2715_v45 = vsel %vm562_vm5, %v2714_v53, %v2713_v50  ;;  %v2763_v2 = vrot.slane %v2732_v13, 7  ;;  %v2765_v42 = vrot.slane %v2733_v41, 6  ;;  %v2738_v22 = vmul.f32 %v5475_v61, %v5475_v61 }
 0x51a   :  { %v2717_v34 = vsel %vm565_vm6, %v2716_v39, %v2715_v45  ;;  %v2767_v32 = vrot.slane %v2734_v44, 5  ;;  %v2769_v7 = vrot.slane %v2735_v46, 4  ;;  %v2771_v33 = vrot.slane %v2736_v26, 3 }
 0x51b   :  { %v2719_v6 = vsel %vm568_vm7, %v2718_v11, %v2717_v34  ;;  %v2764_v3 = vsel %vm550_vm1, %v2763_v2, %v2731_v17  ;;  %v2740_v23 = vmul.f32 %v5490_v49, %v5490_v49  ;;  %v2773_v30 = vrot.slane %v2737_v24, 2  ;;  %v4326_v24 = vld [vmem:[#allocation7 + $0x8] sm:$0xff]   ;;  %v4327_v2 = vld [vmem:[#allocation7] sm:$0xff]  }
 0x51c   :  { %v2725_v51 = vsel %vm206_vm0, %v2719_v6, 0.0  ;;  %v2766_v48 = vsel %vm553_vm2, %v2765_v42, %v2764_v3  ;;  %v2741_v18 = vmul.f32 %v5492_v5, %v5492_v5  ;;  %v2742_v12 = vmul.f32 %v5495_v56, %v5495_v56  ;;  %4237 = vmatpush3.bf16.msra.mxu0 %v4326_v24 }
 0x51d   :  { %2726 = vadd.xlane.f32.xlu1 %v2725_v51  ;;  %v2768_v27 = vsel %vm556_vm3, %v2767_v32, %v2766_v48  ;;  %v2775_v28 = vrot.slane %v2738_v22, 1  ;;  %v2739_v58 = vmul.f32 %v5488_v52, %v5488_v52  ;;  %v2743_v4 = vmul.f32 %v5497_v25, %v5497_v25  ;;  %4238 = vmatprep.subr.bf16.mxu0 %v4598_v15 }
 0x51e   :  { %v2770_v43 = vsel %vm559_vm4, %v2769_v7, %v2768_v27  ;;  %v2744_v19 = vmul.f32 %v5499_v54, %v5499_v54  ;;  %v2777_v63 = vrot.slane %v2740_v23, 7  ;;  %v2779_v62 = vrot.slane %v2741_v18, 6 }
 0x51f   :  { %v2772_v8 = vsel %vm562_vm5, %v2771_v33, %v2770_v43  ;;  %v2745_v31 = vmul.f32 %v5502_v47, %v5502_v47  ;;  %v2746_v29 = vmul.f32 %v5504_v0, %v5504_v0  ;;  %v2781_v37 = vrot.slane %v2742_v12, 5 }
 0x520   :  { %v2774_v35 = vsel %vm565_vm6, %v2773_v30, %v2772_v8  ;;  %v2778_v53 = vsel %vm550_vm1, %v2777_v63, %v2739_v58  ;;  %v2783_v11 = vrot.slane %v2743_v4, 4  ;;  %v2785_v13 = vrot.slane %v2744_v19, 3  ;;  %4239 = vmatpush3.bf16.msra.mxu0 %v4327_v2 }
 0x521   :  { %v2776_v21 = vsel %vm568_vm7, %v2775_v28, %v2774_v35  ;;  %v2780_v39 = vsel %vm553_vm2, %v2779_v62, %v2778_v53  ;;  %v2787_v44 = vrot.slane %v2745_v31, 2  ;;  %v2789_v17 = vrot.slane %v2746_v29, 1  ;;  %4264 = vmatprep.subr.bf16.mxu0 %v4598_v15 }
 0x522   :  { %v2793_v16 = vsel %vm206_vm0, %v2776_v21, 0.0  ;;  %v2782_v40 = vsel %vm556_vm3, %v2781_v37, %v2780_v39  ;;  %v2909_v28 = vsub.s32 4, %v4834_v10  ;;  %v2929_v58 = vsub.s32 5, %v4834_v10 }
 0x523   :  { %2794 = vadd.xlane.f32.xlu0 %v2793_v16  ;;  %v2784_v41 = vsel %vm559_vm4, %v2783_v11, %v2782_v40 }
 0x524   :  { %v2786_v50 = vsel %vm562_vm5, %v2785_v13, %v2784_v41  ;;  %v5583_v29 = vrot.slane %v5410_v9, %v2909_v28  ;;  %v5586_v53 = vrot.slane %v5410_v9, %v2929_v58 }
 0x525   :  { %v2788_v46 = vsel %vm565_vm6, %v2787_v44, %v2786_v50 }
 0x526   :  { %v2790_v26 = vsel %vm568_vm7, %v2789_v17, %v2788_v46 }
 0x527   :  { %v2796_v45 = vsel %vm206_vm0, %v2790_v26, 0.0 }
 0x528   :  { %2797 = vadd.xlane.f32.xlu1 %v2796_v45 }
 0x5a0   :  { %v2724_v42 = vpop.xlane.xlu0 %2723 }
 0x5a1   :  { %v2729_v34 = vmul.f32 0.03125, %v2724_v42 }
 0x5a3   :  { %v2801_v3 = vmul.f32 %v2729_v34, %v2729_v34  ;;  %v2809_v4 = vrot.slane %v2729_v34, 1  ;;  %v2810_v8 = vrot.slane %v2729_v34, 2  ;;  %v2811_v19 = vrot.slane %v2729_v34, 3 }
 0x5a4   :  { %v2812_v63 = vrot.slane %v2729_v34, 4  ;;  %v2813_v62 = vrot.slane %v2729_v34, 5  ;;  %v2814_v35 = vrot.slane %v2729_v34, 6  ;;  %v2815_v31 = vrot.slane %v2729_v34, 7 }
 0x5a5   :  { %v2839_v37 = vsub.f32 %v5461_v55, %v2729_v34  ;;  %v2840_v16 = vsub.f32 %v5463_v20, %v2809_v4  ;;  %v2841_v39 = vsub.f32 %v5465_v36, %v2810_v8  ;;  %v2842_v11 = vsub.f32 %v5467_v59, %v2811_v19 }
 0x5a6   :  { %v2727_v22 = vpop.xlane.xlu1 %2726  ;;  %v2843_v40 = vsub.f32 %v5469_v1, %v2812_v63  ;;  %v2844_v13 = vsub.f32 %v5471_v60, %v2813_v62  ;;  %v2845_v41 = vsub.f32 %v5473_v38, %v2814_v35  ;;  %v2846_v44 = vsub.f32 %v5475_v61, %v2815_v31 }
 0x5a7   :  { %v5575_v7 = vmul.f32 0.03125, %v2727_v22 }
 0x5a9   :  { %v2802_v27 = vmul.f32 %v5575_v7, %v5575_v7  ;;  %v2816_v21 = vrot.slane %v5575_v7, 1  ;;  %v2817_v50 = vrot.slane %v5575_v7, 2  ;;  %v2818_v17 = vrot.slane %v5575_v7, 3 }
 0x5aa   :  { %v2819_v55 = vrot.slane %v5575_v7, 4  ;;  %v2820_v20 = vrot.slane %v5575_v7, 5  ;;  %v2821_v36 = vrot.slane %v5575_v7, 6  ;;  %v2822_v59 = vrot.slane %v5575_v7, 7 }
 0x5ab   :  { %v2847_v1 = vsub.f32 %v5488_v52, %v5575_v7  ;;  %v2848_v60 = vsub.f32 %v5490_v49, %v2816_v21  ;;  %v2849_v22 = vsub.f32 %v5492_v5, %v2817_v50 }
 0x5ac   :  { %v2795_v6 = vpop.xlane.xlu0 %2794  ;;  %v2852_v52 = vsub.f32 %v5499_v54, %v2820_v20  ;;  %v2853_v49 = vsub.f32 %v5502_v47, %v2821_v36  ;;  %v2854_v7 = vsub.f32 %v5504_v0, %v2822_v59 }
 0x5ad   :  { %v2799_v32 = vmul.f32 0.03125, %v2795_v6  ;;  %v2850_v6 = vsub.f32 %v5495_v56, %v2818_v17 }
 0x5af   :  { %v2803_v51 = vsub.f32 %v2799_v32, %v2801_v3 }
 0x5b1   :  { %v2805_v48 = vmax.f32 %v2803_v51, 0.0  ;;  %v2798_v33 = vpop.xlane.xlu1 %2797  ;;  %v2851_v51 = vsub.f32 %v5497_v25, %v2819_v55 }
 0x5b2   :  { %v2800_v30 = vmul.f32 0.03125, %v2798_v33 }
 0x5b3   :  { %v2855_v23 = vadd.f32 1e-12, %v2805_v48 }
 0x5b4   :  { %v2804_v18 = vsub.f32 %v2800_v30, %v2802_v27 }
 0x5b5   :  { %4404 = vrsqrt.f32 %v2855_v23 }
 0x5b6   :  { %v2806_v12 = vmax.f32 %v2804_v18, 0.0 }
 0x5b8   :  { %v2856_v43 = vadd.f32 1e-12, %v2806_v12 }
 0x5ba   :  { %4406 = vrsqrt.f32 %v2856_v43 }
 0x5c2   :  { %v4405_v46 = vpop.eup %4404 }
 0x5c3   :  { %v2861_v38 = vrot.slane %v4405_v46, 1  ;;  %v2862_v61 = vrot.slane %v4405_v46, 2  ;;  %v2863_v26 = vrot.slane %v4405_v46, 3  ;;  %v2864_v45 = vrot.slane %v4405_v46, 4 }
 0x5c4   :  { %v2865_v24 = vrot.slane %v4405_v46, 5  ;;  %v2866_v2 = vrot.slane %v4405_v46, 6  ;;  %v2867_v42 = vrot.slane %v4405_v46, 7  ;;  %v2891_v34 = vmul.f32 %v4405_v46, %v2839_v37 }
 0x5c5   :  { %v2892_v3 = vmul.f32 %v2861_v38, %v2840_v16  ;;  %v2893_v32 = vmul.f32 %v2862_v61, %v2841_v39  ;;  %v2894_v48 = vmul.f32 %v2863_v26, %v2842_v11  ;;  %v2895_v33 = vmul.f32 %v2864_v45, %v2843_v40 }
 0x5c6   :  { %v2896_v23 = vmul.f32 %v2865_v24, %v2844_v13  ;;  %v2897_v27 = vmul.f32 %v2866_v2, %v2845_v41  ;;  %v2898_v18 = vmul.f32 %v2867_v42, %v2846_v44  ;;  %v2911_v5 = vmul.f32 %v5583_v29, %v2891_v34 }
 0x5c7   :  { %v4407_v30 = vpop.eup %4406  ;;  %v2912_v56 = vmul.f32 %v5583_v29, %v2892_v3  ;;  %v2913_v12 = vmul.f32 %v5583_v29, %v2893_v32  ;;  %v2914_v37 = vmul.f32 %v5583_v29, %v2894_v48  ;;  %v2915_v16 = vmul.f32 %v5583_v29, %v2895_v33 }
 0x5c8   :  { %v2868_v43 = vrot.slane %v4407_v30, 1  ;;  %v2869_v25 = vrot.slane %v4407_v30, 2  ;;  %v2870_v28 = vrot.slane %v4407_v30, 3  ;;  %v2871_v54 = vrot.slane %v4407_v30, 4 }
 0x5c9   :  { %v2872_v58 = vrot.slane %v4407_v30, 5  ;;  %v2873_v47 = vrot.slane %v4407_v30, 6  ;;  %v2874_v4 = vrot.slane %v4407_v30, 7  ;;  %v2899_v0 = vmul.f32 %v4407_v30, %v2847_v1 }
 0x5ca   :  { %v2900_v8 = vmul.f32 %v2868_v43, %v2848_v60  ;;  %v2901_v19 = vmul.f32 %v2869_v25, %v2849_v22  ;;  %v2902_v63 = vmul.f32 %v2870_v28, %v2850_v6  ;;  %v2903_v62 = vmul.f32 %v2871_v54, %v2851_v51 }
 0x5cb   :  { %v2904_v35 = vmul.f32 %v2872_v58, %v2852_v52  ;;  %v2905_v31 = vmul.f32 %v2873_v47, %v2853_v49  ;;  %v2906_v21 = vmul.f32 %v2874_v4, %v2854_v7  ;;  %v2916_v39 = vmul.f32 %v5583_v29, %v2896_v23 }
 0x5cc   :  { %v2920_v11 = vmul.f32 %v5583_v29, %v2900_v8  ;;  %v2921_v40 = vmul.f32 %v5583_v29, %v2901_v19  ;;  %v2917_v13 = vmul.f32 %v5583_v29, %v2897_v27  ;;  %v2918_v41 = vmul.f32 %v5583_v29, %v2898_v18 }
 0x5cd   :  { %v2922_v44 = vmul.f32 %v5583_v29, %v2902_v63  ;;  %v5623_v50 = vadd.f32 %v5586_v53, %v2912_v56  ;;  %v2919_v17 = vmul.f32 %v5583_v29, %v2899_v0  ;;  %v2923_v55 = vmul.f32 %v5583_v29, %v2903_v62 }
 0x5ce   :  { %v2924_v20 = vmul.f32 %v5583_v29, %v2904_v35  ;;  %v5629_v46 = vadd.f32 %v5586_v53, %v2913_v12  ;;  %v2925_v36 = vmul.f32 %v5583_v29, %v2905_v31  ;;  %v2926_v59 = vmul.f32 %v5583_v29, %v2906_v21 }
 0x5cf   :  { %v5634_v1 = vadd.f32 %v5586_v53, %v2914_v37  ;;  %v5637_v60 = vadd.f32 %v5586_v53, %v2920_v11  ;;  %v5640_v38 = vadd.f32 %v5586_v53, %v2911_v5  ;;  %v5643_v61 = vadd.f32 %v5586_v53, %v2915_v16 }
 0x5d0   :  { %v5646_v26 = vadd.f32 %v5586_v53, %v2916_v39  ;;  %v5649_v45 = vadd.f32 %v5586_v53, %v2921_v40  ;;  %v5652_v29 = vadd.f32 %v5586_v53, %v2917_v13  ;;  %v5655_v24 = vadd.f32 %v5586_v53, %v2918_v41 }
 0x5d1   :  { %v5658_v2 = vadd.f32 %v5586_v53, %v2922_v44  ;;  %v2948_v42 = vpack.c.bf16 %v5623_v50, %v5623_v50  ;;  %v5663_v34 = vadd.f32 %v5586_v53, %v2919_v17  ;;  %v5666_v22 = vadd.f32 %v5586_v53, %v2923_v55 }
 0x5d2   :  { %v5669_v6 = vadd.f32 %v5586_v53, %v2924_v20  ;;  %v2949_v3 = vpack.c.bf16 %v5629_v46, %v5629_v46  ;;  %v5674_v32 = vadd.f32 %v5586_v53, %v2925_v36  ;;  %v5677_v51 = vadd.f32 %v5586_v53, %v2926_v59 }
 0x5d3   :  { %v2950_v52 = vpack.c.bf16 %v5634_v1, %v5634_v1  ;;  %v2956_v49 = vpack.c.bf16 %v5637_v60, %v5637_v60  ;;  %v2947_v7 = vpack.c.bf16 %v5640_v38, %v5640_v38  ;;  %v2951_v48 = vpack.c.bf16 %v5643_v61, %v5643_v61 }
 0x5d4   :  { %v2952_v33 = vpack.c.bf16 %v5646_v26, %v5646_v26  ;;  %v2957_v23 = vpack.c.bf16 %v5649_v45, %v5649_v45  ;;  %v2953_v53 = vpack.c.bf16 %v5652_v29, %v5652_v29  ;;  %v2954_v27 = vpack.c.bf16 %v5655_v24, %v5655_v24 }
 0x5d5   :  { %v2958_v30 = vpack.c.bf16 %v5658_v2, %v5658_v2  ;;  %v2991_v18 = vunpack.c.l.b16 %v2948_v42  ;;  %v2955_v5 = vpack.c.bf16 %v5663_v34, %v5663_v34  ;;  %v2959_v56 = vpack.c.bf16 %v5666_v22, %v5666_v22 }
 0x5d6   :  { %v2960_v12 = vpack.c.bf16 %v5669_v6, %v5669_v6  ;;  %v2992_v43 = vunpack.c.l.b16 %v2949_v3  ;;  %v2961_v25 = vpack.c.bf16 %v5674_v32, %v5674_v32  ;;  %v2962_v28 = vpack.c.bf16 %v5677_v51, %v5677_v51 }
 0x5d7   :  { %v2993_v54 = vunpack.c.l.b16 %v2950_v52  ;;  %v2999_v58 = vunpack.c.l.b16 %v2956_v49  ;;  %v2990_v47 = vunpack.c.l.b16 %v2947_v7  ;;  %v2994_v4 = vunpack.c.l.b16 %v2951_v48 }
 0x5d8   :  { %v2995_v0 = vunpack.c.l.b16 %v2952_v33  ;;  %v3000_v8 = vunpack.c.l.b16 %v2957_v23  ;;  %v2996_v19 = vunpack.c.l.b16 %v2953_v53  ;;  %v3001_v63 = vunpack.c.l.b16 %v2958_v30 }
 0x5d9   :  { %v3006_v62 = vrot.slane %v2991_v18, 7  ;;  %v3008_v35 = vrot.slane %v2992_v43, 6  ;;  %v2997_v31 = vunpack.c.l.b16 %v2954_v27  ;;  %v2998_v21 = vunpack.c.l.b16 %v2955_v5 }
 0x5da   :  { %v3002_v37 = vunpack.c.l.b16 %v2959_v56  ;;  %v3003_v16 = vunpack.c.l.b16 %v2960_v12  ;;  %v3010_v11 = vrot.slane %v2993_v54, 5  ;;  %v3020_v40 = vrot.slane %v2999_v58, 7  ;;  %v4328_v54 = vld [vmem:[%s6017_s7 + $0x38] sm:$0xff]   ;;  %v4329_v58 = vld [vmem:[%s6017_s7 + $0x30] sm:$0xff]  }
 0x5db   :  { %v3007_v39 = vsel %vm550_vm1, %v3006_v62, %v2990_v47  ;;  %v3022_v13 = vrot.slane %v3000_v8, 6  ;;  %v3004_v41 = vunpack.c.l.b16 %v2961_v25  ;;  %v3005_v44 = vunpack.c.l.b16 %v2962_v28  ;;  %4245 = vmatpush3.bf16.msra.mxu1 %v4328_v54  ;;  %v4330_v47 = vld [vmem:[%s6017_s7 + $0x28] sm:$0xff]   ;;  %v4333_v8 = vld [vmem:[%s6017_s7 + $0x10] sm:$0xff]   ;;  %v3861_v62 = vld [vmem:[%s6021_s11] ss:$0 sm:$0xff] }
 0x5dc   :  { %v3009_v17 = vsel %vm553_vm2, %v3008_v35, %v3007_v39  ;;  %v3012_v55 = vrot.slane %v2994_v4, 4  ;;  %v3014_v36 = vrot.slane %v2995_v0, 3  ;;  %v3021_v59 = vsel %vm550_vm1, %v3020_v40, %v2998_v21  ;;  %4246 = vmatprep.subr.bf16.mxu1 %v4598_v15  ;;  %v4331_v4 = vld [vmem:[%s6017_s7 + $0x20] sm:$0xff]   ;;  %v4332_v0 = vld [vmem:[%s6017_s7 + $0x18] sm:$0xff]  }
 0x5dd   :  { %v3011_v20 = vsel %vm556_vm3, %v3010_v11, %v3009_v17  ;;  %v3024_v42 = vrot.slane %v3001_v63, 5  ;;  %v3016_v52 = vrot.slane %v2996_v19, 2  ;;  %v3023_v49 = vsel %vm553_vm2, %v3022_v13, %v3021_v59  ;;  %v4334_v19 = vld [vmem:[%s6017_s7 + $0x8] sm:$0xff]   ;;  %v4335_v63 = vld [vmem:[%s6017_s7] sm:$0xff]  }
 0x5de   :  { %v3013_v3 = vsel %vm559_vm4, %v3012_v55, %v3011_v20  ;;  %v3026_v7 = vrot.slane %v3002_v37, 4  ;;  %v3028_v23 = vrot.slane %v3003_v16, 3  ;;  %v3030_v30 = vrot.slane %v3004_v41, 2 }
 0x5df   :  { %v3015_v48 = vsel %vm562_vm5, %v3014_v36, %v3013_v3  ;;  %v3025_v33 = vsel %vm556_vm3, %v3024_v42, %v3023_v49  ;;  %v3018_v18 = vrot.slane %v2997_v31, 1  ;;  %v3032_v56 = vrot.slane %v3005_v44, 1  ;;  %4247 = vmatpush3.bf16.msra.mxu1 %v4329_v58 }
 0x5e0   :  { %v3017_v53 = vsel %vm565_vm6, %v3016_v52, %v3015_v48  ;;  %v3027_v27 = vsel %vm559_vm4, %v3026_v7, %v3025_v33  ;;  %4248 = vmatprep.subr.bf16.mxu1 %v4598_v15 }
 0x5e1   :  { %v3029_v5 = vsel %vm562_vm5, %v3028_v23, %v3027_v27  ;;  %v3019_v43 = vsel %vm568_vm7, %v3018_v18, %v3017_v53  ;;  %v3128_v27 = vsub.s32 6, %v4834_v10 }
 0x5e2   :  { %v3031_v12 = vsel %vm565_vm6, %v3030_v30, %v3029_v5 }
 0x5e3   :  { %v3033_v25 = vsel %vm568_vm7, %v3032_v56, %v3031_v12  ;;  %4249 = vmatpush3.bf16.msra.mxu1 %v4330_v47  ;;  %v3129_v30 = vrot.slane %v5410_v9, %v3128_v27 }
 0x5e4   :  { %v3034_v28 = vpack.c.b16 %v3033_v25, %v3019_v43  ;;  %4250 = vmatprep.subr.bf16.mxu1 %v4598_v15 }
 0x5e6   :  { %4241 = vmatmul.mubr.msk.bf16.vlgmr.msra.gmra.mxu0 %vm206_vm0, %v3034_v28 }
 0x5e7   :  { %4268 = vmatprep.mubr.msk.bf16.mxu0 %vm4599_vm8, %v4598_v15  ;;  %4251 = vmatpush3.bf16.msra.mxu1 %v4331_v4 }
 0x5e8   :  { %4252 = vmatprep.subr.bf16.mxu1 %v4598_v15 }
 0x5eb   :  { %4253 = vmatpush3.bf16.msra.mxu1 %v4332_v0 }
 0x5ec   :  { %4254 = vmatprep.subr.bf16.mxu1 %v4598_v15 }
 0x5ef   :  { %4255 = vmatpush3.bf16.msra.mxu1 %v4333_v8 }
 0x5f0   :  { %4256 = vmatprep.subr.bf16.mxu1 %v4598_v15 }
 0x5f3   :  { %4257 = vmatpush3.bf16.msra.mxu1 %v4334_v19 }
 0x5f4   :  { %4258 = vmatprep.subr.bf16.mxu1 %v4598_v15 }
 0x5f7   :  { %4259 = vmatpush3.bf16.msra.mxu1 %v4335_v63 }
 0x6a6   :  { %v3084_v35 = vpop.f32.mrf.mxu0 }
 0x6a7   :  { %v3085_v31 = vadd.f32 %v3861_v62, %v3084_v35 }
 0x6a8   :  { %v4242_v21 = vpop.f32.mrf.mxu0 }
 0x6a9   :  { %v3091_v37 = vmul.f32 %v3085_v31, %v3085_v31 }
 0x6aa   :  { %v3087_v16 = vpop.f32.mrf.mxu0 }
 0x6ab   :  { %v3093_v39 = vmul.f32 %v3091_v37, %v3085_v31  ;;  %v3088_v11 = vadd.f32 %v3861_v62, %v3087_v16 }
 0x6ac   :  { %v4243_v40 = vpop.f32.mrf.mxu0 }
 0x6ad   :  { %v3095_v13 = vmul.f32 0.044715, %v3093_v39  ;;  %v3092_v41 = vmul.f32 %v3088_v11, %v3088_v11 }
 0x6af   :  { %v3097_v44 = vadd.f32 %v3095_v13, %v3085_v31  ;;  %v3094_v17 = vmul.f32 %v3092_v41, %v3088_v11 }
 0x6b1   :  { %v3099_v55 = vmul.f32 0.7978846, %v3097_v44  ;;  %v3096_v20 = vmul.f32 0.044715, %v3094_v17 }
 0x6b3   :  { %4408 = vtanh.f32 %v3099_v55  ;;  %v3098_v36 = vadd.f32 %v3096_v20, %v3088_v11 }
 0x6b5   :  { %v3100_v59 = vmul.f32 0.7978846, %v3098_v36 }
 0x6b7   :  { %4410 = vtanh.f32 %v3100_v59 }
 0x6c0   :  { %v4409_v42 = vpop.eup %4408 }
 0x6c1   :  { %v3103_v3 = vadd.f32 1.0, %v4409_v42 }
 0x6c3   :  { %v3105_v49 = vmul.f32 0.5, %v3103_v3 }
 0x6c4   :  { %v4411_v52 = vpop.eup %4410 }
 0x6c5   :  { %v3104_v7 = vadd.f32 1.0, %v4411_v52  ;;  %v3107_v33 = vmul.f32 %v3105_v49, %v3085_v31 }
 0x6c7   :  { %v3106_v48 = vmul.f32 0.5, %v3104_v7 }
 0x6c9   :  { %v3108_v23 = vmul.f32 %v3106_v48, %v3088_v11 }
 0x6cb   :  { %v3109_v53 = vpack.c.bf16 %v3108_v23, %v3107_v33 }
 0x6cd   :  { %4261 = vmatmul.mubr.bf16.vlgmr.msra.gmra.mxu1 %v3109_v53 }
 0x78d   :  { %v3212_v18 = vpop.f32.mrf.mxu1 }
 0x78e   :  { %v3213_v5 = vadd.f32 %v3212_v18, %v3129_v30 }
 0x78f   :  { %v4262_v56 = vpop.f32.mrf.mxu1 }
 0x790   :  { %v3221_v12 = vrot.slane %v3213_v5, 1  ;;  %v3222_v43 = vrot.slane %v3213_v5, 2  ;;  %v3223_v25 = vrot.slane %v3213_v5, 3  ;;  %v3224_v28 = vrot.slane %v3213_v5, 4 }
 0x791   :  { %v3215_v54 = vpop.f32.mrf.mxu1  ;;  %v3225_v58 = vrot.slane %v3213_v5, 5  ;;  %v3226_v47 = vrot.slane %v3213_v5, 6  ;;  %v3227_v4 = vrot.slane %v3213_v5, 7  ;;  %v5761_v0 = vadd.f32 %v3213_v5, %v5640_v38 }
 0x792   :  { %v5764_v8 = vadd.f32 %v3221_v12, %v5623_v50  ;;  %v5767_v19 = vadd.f32 %v3222_v43, %v5629_v46  ;;  %v5770_v9 = vadd.f32 %v3223_v25, %v5634_v1  ;;  %v5772_v63 = vadd.f32 %v3215_v54, %v3129_v30 }
 0x793   :  { %v4263_v62 = vpop.f32.mrf.mxu1  ;;  %v5775_v35 = vadd.f32 %v3224_v28, %v5643_v61  ;;  %v5778_v31 = vadd.f32 %v3225_v58, %v5646_v26  ;;  %v5781_v38 = vadd.f32 %v3226_v47, %v5652_v29  ;;  %v5784_v50 = vadd.f32 %v3227_v4, %v5655_v24 }
 0x794   :  { %v3283_v46 = vrot.slane %v5764_v8, 7  ;;  %v3285_v1 = vrot.slane %v5767_v19, 6  ;;  %v3287_v21 = vrot.slane %v5770_v9, 5  ;;  %v3321_v26 = vmul.f32 %v5761_v0, %v5761_v0 }
 0x795   :  { %v3289_v37 = vrot.slane %v5775_v35, 4  ;;  %v3291_v61 = vrot.slane %v5778_v31, 3  ;;  %v3293_v16 = vrot.slane %v5781_v38, 2  ;;  %v3322_v24 = vmul.f32 %v5764_v8, %v5764_v8 }
 0x796   :  { %v3284_v29 = vsel %vm550_vm1, %v3283_v46, %v5761_v0  ;;  %v3323_v39 = vmul.f32 %v5767_v19, %v5767_v19  ;;  %v3324_v11 = vmul.f32 %v5770_v9, %v5770_v9  ;;  %v3325_v13 = vmul.f32 %v5775_v35, %v5775_v35 }
 0x797   :  { %v3286_v40 = vsel %vm553_vm2, %v3285_v1, %v3284_v29  ;;  %v3326_v41 = vmul.f32 %v5778_v31, %v5778_v31  ;;  %v3327_v44 = vmul.f32 %v5781_v38, %v5781_v38  ;;  %v3295_v55 = vrot.slane %v5784_v50, 1 }
 0x798   :  { %v3288_v17 = vsel %vm556_vm3, %v3287_v21, %v3286_v40  ;;  %v3353_v20 = vrot.slane %v3322_v24, 7  ;;  %v3355_v36 = vrot.slane %v3323_v39, 6  ;;  %v3328_v42 = vmul.f32 %v5784_v50, %v5784_v50 }
 0x799   :  { %v3290_v59 = vsel %vm559_vm4, %v3289_v37, %v3288_v17  ;;  %v3357_v3 = vrot.slane %v3324_v11, 5  ;;  %v3359_v52 = vrot.slane %v3325_v13, 4  ;;  %v3361_v48 = vrot.slane %v3326_v41, 3 }
 0x79a   :  { %v3292_v49 = vsel %vm562_vm5, %v3291_v61, %v3290_v59  ;;  %v3354_v7 = vsel %vm550_vm1, %v3353_v20, %v3321_v26  ;;  %v3363_v33 = vrot.slane %v3327_v44, 2  ;;  %v3228_v27 = vrot.slane %v5772_v63, 1 }
 0x79b   :  { %v3294_v23 = vsel %vm565_vm6, %v3293_v16, %v3292_v49  ;;  %v3356_v53 = vsel %vm553_vm2, %v3355_v36, %v3354_v7  ;;  %v3229_v30 = vrot.slane %v5772_v63, 2  ;;  %v3230_v56 = vrot.slane %v5772_v63, 3 }
 0x79c   :  { %v3296_v18 = vsel %vm568_vm7, %v3295_v55, %v3294_v23  ;;  %v3358_v5 = vsel %vm556_vm3, %v3357_v3, %v3356_v53  ;;  %v3231_v12 = vrot.slane %v5772_v63, 4  ;;  %v3232_v28 = vrot.slane %v5772_v63, 5 }
 0x79d   :  { %v3313_v43 = vsel %vm206_vm0, %v3296_v18, 0.0  ;;  %v3360_v25 = vsel %vm559_vm4, %v3359_v52, %v3358_v5  ;;  %v3233_v54 = vrot.slane %v5772_v63, 6  ;;  %v3365_v47 = vrot.slane %v3328_v42, 1 }
 0x79e   :  { %3314 = vadd.xlane.f32.xlu0 %v3313_v43  ;;  %v3362_v58 = vsel %vm562_vm5, %v3361_v48, %v3360_v25  ;;  %v3234_v4 = vrot.slane %v5772_v63, 7  ;;  %v5831_v62 = vadd.f32 %v3228_v27, %v5637_v60  ;;  %v5835_v1 = vadd.f32 %v3229_v30, %v5649_v45 }
 0x79f   :  { %v3364_v46 = vsel %vm565_vm6, %v3363_v33, %v3362_v58  ;;  %v5838_v21 = vadd.f32 %v3230_v56, %v5658_v2  ;;  %v5841_v37 = vadd.f32 %v3231_v12, %v5666_v22  ;;  %v5845_v16 = vadd.f32 %v3232_v28, %v5669_v6  ;;  %v4336_v58 = vld [vmem:[#allocation8 + $0x8] sm:$0xff]  }
 0x7a0   :  { %v3366_v61 = vsel %vm568_vm7, %v3365_v47, %v3364_v46  ;;  %v5848_v26 = vadd.f32 %v3233_v54, %v5674_v32  ;;  %v5853_v45 = vadd.f32 %v5772_v63, %v5663_v34  ;;  %v3297_v2 = vrot.slane %v5831_v62, 7  ;;  %4265 = vmatpush3.bf16.msra.mxu0 %v4336_v58  ;;  %v4337_v47 = vld [vmem:[#allocation8] sm:$0xff]  }
 0x7a1   :  { %v3383_v60 = vsel %vm206_vm0, %v3366_v61, 0.0  ;;  %v3299_v29 = vrot.slane %v5835_v1, 6  ;;  %v5858_v22 = vadd.f32 %v3234_v4, %v5677_v51  ;;  %v3301_v6 = vrot.slane %v5838_v21, 5  ;;  %4266 = vmatprep.subr.bf16.mxu0 %v4598_v15 }
 0x7a2   :  { %3384 = vadd.xlane.f32.xlu0 %v3383_v60  ;;  %v3303_v24 = vrot.slane %v5841_v37, 4  ;;  %v3298_v32 = vsel %vm550_vm1, %v3297_v2, %v5853_v45  ;;  %v3305_v39 = vrot.slane %v5845_v16, 3  ;;  %v3330_v34 = vmul.f32 %v5831_v62, %v5831_v62 }
 0x7a3   :  { %v3331_v63 = vmul.f32 %v5835_v1, %v5835_v1  ;;  %v3300_v11 = vsel %vm553_vm2, %v3299_v29, %v3298_v32  ;;  %v3307_v51 = vrot.slane %v5848_v26, 2  ;;  %v3332_v40 = vmul.f32 %v5838_v21, %v5838_v21 }
 0x7a4   :  { %v3333_v13 = vmul.f32 %v5841_v37, %v5841_v37  ;;  %v3302_v41 = vsel %vm556_vm3, %v3301_v6, %v3300_v11  ;;  %v3329_v44 = vmul.f32 %v5853_v45, %v5853_v45  ;;  %v3334_v17 = vmul.f32 %v5845_v16, %v5845_v16  ;;  %4267 = vmatpush3.bf16.msra.mxu0 %v4337_v47 }
 0x7a5   :  { %v3367_v55 = vrot.slane %v3330_v34, 7  ;;  %v3304_v20 = vsel %vm559_vm4, %v3303_v24, %v3302_v41  ;;  %v3309_v36 = vrot.slane %v5858_v22, 1  ;;  %v3335_v59 = vmul.f32 %v5848_v26, %v5848_v26  ;;  %4272 = vmatprep.subr.bf16.mxu0 %v4598_v15 }
 0x7a6   :  { %v3369_v42 = vrot.slane %v3331_v63, 6  ;;  %v3306_v3 = vsel %vm562_vm5, %v3305_v39, %v3304_v20  ;;  %v3336_v52 = vmul.f32 %v5858_v22, %v5858_v22  ;;  %v3371_v7 = vrot.slane %v3332_v40, 5 }
 0x7a7   :  { %v3368_v49 = vsel %vm550_vm1, %v3367_v55, %v3329_v44  ;;  %v3308_v48 = vsel %vm565_vm6, %v3307_v51, %v3306_v3  ;;  %v3373_v23 = vrot.slane %v3333_v13, 4  ;;  %v3375_v30 = vrot.slane %v3334_v17, 3  ;;  %v5905_v13 = vld [vmem:[#allocation11 + $0x8] sm:$0x3] }
 0x7a8   :  { %v3370_v33 = vsel %vm553_vm2, %v3369_v42, %v3368_v49  ;;  %v3310_v53 = vsel %vm568_vm7, %v3309_v36, %v3308_v48  ;;  %v3377_v56 = vrot.slane %v3335_v59, 2  ;;  %v3379_v43 = vrot.slane %v3336_v52, 1  ;;  %v4437_v42 = vld [vmem:[#allocation11] sm:$0xff] }
 0x7a9   :  { %v3372_v27 = vsel %vm556_vm3, %v3371_v7, %v3370_v33  ;;  %v3316_v18 = vsel %vm206_vm0, %v3310_v53, 0.0  ;;  %v3499_v63 = vsub.s32 7, %v4834_v10  ;;  %v5913_v48 = vrot.slane %v5905_v13, %v4871_v57 }
 0x7aa   :  { %v3374_v5 = vsel %vm559_vm4, %v3373_v23, %v3372_v27  ;;  %3317 = vadd.xlane.f32.xlu1 %v3316_v18 }
 0x7ab   :  { %v3376_v12 = vsel %vm562_vm5, %v3375_v30, %v3374_v5  ;;  %v5907_v3 = vrot.slane %v4437_v42, %v3499_v63 }
 0x7ac   :  { %v3378_v25 = vsel %vm565_vm6, %v3377_v56, %v3376_v12 }
 0x7ad   :  { %v3380_v28 = vsel %vm568_vm7, %v3379_v43, %v3378_v25 }
 0x7ae   :  { %v3386_v54 = vsel %vm206_vm0, %v3380_v28, 0.0 }
 0x7af   :  { %3387 = vadd.xlane.f32.xlu1 %v3386_v54 }
 0x827   :  { %v3315_v4 = vpop.xlane.xlu0 %3314 }
 0x828   :  { %v3319_v46 = vmul.f32 0.03125, %v3315_v4 }
 0x82a   :  { %v3391_v60 = vmul.f32 %v3319_v46, %v3319_v46  ;;  %v3399_v40 = vrot.slane %v3319_v46, 1  ;;  %v3400_v41 = vrot.slane %v3319_v46, 2  ;;  %v3401_v44 = vrot.slane %v3319_v46, 3 }
 0x82b   :  { %v3385_v61 = vpop.xlane.xlu0 %3384  ;;  %v3402_v17 = vrot.slane %v3319_v46, 4  ;;  %v3403_v55 = vrot.slane %v3319_v46, 5  ;;  %v3404_v36 = vrot.slane %v3319_v46, 6  ;;  %v3405_v59 = vrot.slane %v3319_v46, 7 }
 0x82c   :  { %v3389_v2 = vmul.f32 0.03125, %v3385_v61  ;;  %v3429_v49 = vsub.f32 %v5761_v0, %v3319_v46  ;;  %v3430_v7 = vsub.f32 %v5764_v8, %v3399_v40  ;;  %v3431_v33 = vsub.f32 %v5767_v19, %v3400_v41 }
 0x82d   :  { %v3432_v23 = vsub.f32 %v5770_v9, %v3401_v44  ;;  %v3433_v53 = vsub.f32 %v5775_v35, %v3402_v17  ;;  %v3434_v27 = vsub.f32 %v5778_v31, %v3403_v55  ;;  %v3435_v5 = vsub.f32 %v5781_v38, %v3404_v36 }
 0x82e   :  { %v3393_v29 = vsub.f32 %v3389_v2, %v3391_v60  ;;  %v3436_v0 = vsub.f32 %v5784_v50, %v3405_v59 }
 0x830   :  { %v3395_v6 = vmax.f32 %v3393_v29, 0.0 }
 0x832   :  { %v3445_v24 = vadd.f32 1e-12, %v3395_v6 }
 0x833   :  { %v3318_v32 = vpop.xlane.xlu1 %3317 }
 0x834   :  { %4412 = vrsqrt.f32 %v3445_v24  ;;  %v5900_v39 = vmul.f32 0.03125, %v3318_v32 }
 0x836   :  { %v3392_v11 = vmul.f32 %v5900_v39, %v5900_v39  ;;  %v3406_v18 = vrot.slane %v5900_v39, 1  ;;  %v3407_v8 = vrot.slane %v5900_v39, 2  ;;  %v3408_v57 = vrot.slane %v5900_v39, 3 }
 0x837   :  { %v3409_v56 = vrot.slane %v5900_v39, 4  ;;  %v3410_v19 = vrot.slane %v5900_v39, 5  ;;  %v3411_v35 = vrot.slane %v5900_v39, 6  ;;  %v3412_v31 = vrot.slane %v5900_v39, 7 }
 0x838   :  { %v3388_v34 = vpop.xlane.xlu1 %3387  ;;  %v3437_v12 = vsub.f32 %v5853_v45, %v5900_v39  ;;  %v3438_v63 = vsub.f32 %v5831_v62, %v3406_v18 }
 0x839   :  { %v3390_v51 = vmul.f32 0.03125, %v3388_v34  ;;  %v3444_v18 = vsub.f32 %v5858_v22, %v3412_v31 }
 0x83b   :  { %v3394_v20 = vsub.f32 %v3390_v51, %v3392_v11 }
 0x83d   :  { %v3396_v52 = vmax.f32 %v3394_v20, 0.0 }
 0x83f   :  { %v3446_v30 = vadd.f32 1e-12, %v3396_v52 }
 0x841   :  { %v4413_v9 = vpop.eup %4412  ;;  %4414 = vrsqrt.f32 %v3446_v30  ;;  %v3443_v30 = vsub.f32 %v5848_v26, %v3411_v35 }
 0x842   :  { %v3451_v38 = vrot.slane %v4413_v9, 1  ;;  %v3452_v43 = vrot.slane %v4413_v9, 2  ;;  %v3453_v50 = vrot.slane %v4413_v9, 3  ;;  %v3454_v25 = vrot.slane %v4413_v9, 4 }
 0x843   :  { %v3455_v28 = vrot.slane %v4413_v9, 5  ;;  %v3456_v54 = vrot.slane %v4413_v9, 6  ;;  %v3457_v58 = vrot.slane %v4413_v9, 7  ;;  %v3481_v47 = vmul.f32 %v4413_v9, %v3429_v49 }
 0x844   :  { %v3482_v4 = vmul.f32 %v3451_v38, %v3430_v7  ;;  %v3483_v46 = vmul.f32 %v3452_v43, %v3431_v33  ;;  %v3484_v61 = vmul.f32 %v3453_v50, %v3432_v23  ;;  %v3485_v60 = vmul.f32 %v3454_v25, %v3433_v53 }
 0x845   :  { %v3486_v2 = vmul.f32 %v3455_v28, %v3434_v27  ;;  %v3487_v29 = vmul.f32 %v3456_v54, %v3435_v5  ;;  %v3488_v6 = vmul.f32 %v3457_v58, %v3436_v0  ;;  %v3501_v24 = vmul.f32 %v5907_v3, %v3481_v47 }
 0x846   :  { %v3502_v32 = vmul.f32 %v5907_v3, %v3482_v4  ;;  %v3503_v45 = vmul.f32 %v5907_v3, %v3483_v46  ;;  %v3504_v39 = vmul.f32 %v5907_v3, %v3484_v61  ;;  %v3505_v34 = vmul.f32 %v5907_v3, %v3485_v60 }
 0x847   :  { %v3506_v11 = vmul.f32 %v5907_v3, %v3486_v2  ;;  %v3507_v51 = vmul.f32 %v5907_v3, %v3487_v29  ;;  %v3508_v40 = vmul.f32 %v5907_v3, %v3488_v6  ;;  %v3521_v20 = vadd.f32 %v5913_v48, %v3501_v24 }
 0x848   :  { %v3522_v41 = vadd.f32 %v5913_v48, %v3502_v32  ;;  %v3523_v44 = vadd.f32 %v5913_v48, %v3503_v45  ;;  %v3524_v17 = vadd.f32 %v5913_v48, %v3504_v39  ;;  %v3525_v55 = vadd.f32 %v5913_v48, %v3505_v34 }
 0x849   :  { %v3526_v36 = vadd.f32 %v5913_v48, %v3506_v11  ;;  %v3527_v62 = vadd.f32 %v5913_v48, %v3507_v51  ;;  %v5947_v59 = vadd.f32 %v5913_v48, %v3508_v40  ;;  %v3439_v33 = vsub.f32 %v5835_v1, %v3407_v8 }
 0x84a   :  { %v3538_v42 = vpack.c.bf16 %v3522_v41, %v3522_v41  ;;  %v3539_v52 = vpack.c.bf16 %v3523_v44, %v3523_v44  ;;  %v3540_v49 = vpack.c.bf16 %v3524_v17, %v3524_v17  ;;  %v3541_v7 = vpack.c.bf16 %v3525_v55, %v3525_v55 }
 0x84b   :  { %v3440_v23 = vsub.f32 %v5838_v21, %v3408_v57  ;;  %v3441_v53 = vsub.f32 %v5841_v37, %v3409_v56  ;;  %v3442_v27 = vsub.f32 %v5845_v16, %v3410_v19  ;;  %v3537_v9 = vpack.c.bf16 %v3521_v20, %v3521_v20 }
 0x84c   :  { %v3578_v5 = vunpack.c.l.b16 %v3538_v42  ;;  %v5955_v0 = vunpack.c.l.b16 %v3539_v52  ;;  %v3542_v38 = vpack.c.bf16 %v3526_v36, %v3526_v36  ;;  %v3543_v43 = vpack.c.bf16 %v3527_v62, %v3527_v62 }
 0x84d   :  { %v3544_v50 = vpack.c.bf16 %v5947_v59, %v5947_v59  ;;  %v3580_v8 = vunpack.c.l.b16 %v3540_v49  ;;  %v5959_v21 = vunpack.c.l.b16 %v3541_v7  ;;  %v3577_v59 = vunpack.c.l.b16 %v3537_v9 }
 0x84e   :  { %v4415_v1 = vpop.eup %4414  ;;  %v3593_v37 = vrot.slane %v3578_v5, 7  ;;  %v3595_v16 = vrot.slane %v5955_v0, 6  ;;  %v3582_v42 = vunpack.c.l.b16 %v3542_v38  ;;  %v3583_v52 = vunpack.c.l.b16 %v3543_v43 }
 0x84f   :  { %v3458_v57 = vrot.slane %v4415_v1, 1  ;;  %v3459_v26 = vrot.slane %v4415_v1, 2  ;;  %v3460_v56 = vrot.slane %v4415_v1, 3  ;;  %v3461_v22 = vrot.slane %v4415_v1, 4 }
 0x850   :  { %v3462_v19 = vrot.slane %v4415_v1, 5  ;;  %v3463_v35 = vrot.slane %v4415_v1, 6  ;;  %v3464_v31 = vrot.slane %v4415_v1, 7  ;;  %v3489_v25 = vmul.f32 %v4415_v1, %v3437_v12 }
 0x851   :  { %v3490_v28 = vmul.f32 %v3458_v57, %v3438_v63  ;;  %v3491_v54 = vmul.f32 %v3459_v26, %v3439_v33  ;;  %v3492_v58 = vmul.f32 %v3460_v56, %v3440_v23  ;;  %v3493_v47 = vmul.f32 %v3461_v22, %v3441_v53 }
 0x852   :  { %v3494_v4 = vmul.f32 %v3462_v19, %v3442_v27  ;;  %v3495_v46 = vmul.f32 %v3463_v35, %v3443_v30  ;;  %v3496_v61 = vmul.f32 %v3464_v31, %v3444_v18  ;;  %v3509_v60 = vmul.f32 %v5907_v3, %v3489_v25 }
 0x853   :  { %v3510_v2 = vmul.f32 %v5907_v3, %v3490_v28  ;;  %v3511_v29 = vmul.f32 %v5907_v3, %v3491_v54  ;;  %v3512_v6 = vmul.f32 %v5907_v3, %v3492_v58  ;;  %v3513_v24 = vmul.f32 %v5907_v3, %v3493_v47 }
 0x854   :  { %v3514_v32 = vmul.f32 %v5907_v3, %v3494_v4  ;;  %v3515_v12 = vmul.f32 %v5907_v3, %v3495_v46  ;;  %v3516_v45 = vmul.f32 %v5907_v3, %v3496_v61  ;;  %v3529_v39 = vadd.f32 %v5913_v48, %v3509_v60 }
 0x855   :  { %v3530_v34 = vadd.f32 %v5913_v48, %v3510_v2  ;;  %v3531_v63 = vadd.f32 %v5913_v48, %v3511_v29  ;;  %v3532_v11 = vadd.f32 %v5913_v48, %v3512_v6  ;;  %v3533_v51 = vadd.f32 %v5913_v48, %v3513_v24  ;;  %v4338_v6 = vld [vmem:[#allocation10 + $0x8] sm:$0xff]   ;;  %v4339_v24 = vld [vmem:[#allocation10] sm:$0xff]  }
 0x856   :  { %v3534_v40 = vadd.f32 %v5913_v48, %v3514_v32  ;;  %v3535_v41 = vadd.f32 %v5913_v48, %v3515_v12  ;;  %v3536_v44 = vadd.f32 %v5913_v48, %v3516_v45  ;;  %v3545_v17 = vpack.c.bf16 %v3529_v39, %v3529_v39 }
 0x857   :  { %v3546_v55 = vpack.c.bf16 %v3530_v34, %v3530_v34  ;;  %v3547_v20 = vpack.c.bf16 %v3531_v63, %v3531_v63  ;;  %v3548_v3 = vpack.c.bf16 %v3532_v11, %v3532_v11  ;;  %v3549_v36 = vpack.c.bf16 %v3533_v51, %v3533_v51 }
 0x858   :  { %v3550_v62 = vpack.c.bf16 %v3534_v40, %v3534_v40  ;;  %v3551_v49 = vpack.c.bf16 %v3535_v41, %v3535_v41  ;;  %v3597_v23 = vrot.slane %v3580_v8, 5  ;;  %v3552_v53 = vpack.c.bf16 %v3536_v44, %v3536_v44 }
 0x859   :  { %v3586_v7 = vunpack.c.l.b16 %v3546_v55  ;;  %v3587_v33 = vunpack.c.l.b16 %v3547_v20  ;;  %v3588_v27 = vunpack.c.l.b16 %v3548_v3  ;;  %v3594_v30 = vsel %vm550_vm1, %v3593_v37, %v3577_v59 }
 0x85a   :  { %v3599_v18 = vrot.slane %v5959_v21, 4  ;;  %v3585_v48 = vunpack.c.l.b16 %v3545_v17  ;;  %v3589_v5 = vunpack.c.l.b16 %v3549_v36  ;;  %v3590_v0 = vunpack.c.l.b16 %v3550_v62 }
 0x85b   :  { %v3596_v1 = vsel %vm553_vm2, %v3595_v16, %v3594_v30  ;;  %v3601_v9 = vrot.slane %v3582_v42, 3  ;;  %v3607_v38 = vrot.slane %v3586_v7, 7  ;;  %v3609_v43 = vrot.slane %v3587_v33, 6 }
 0x85c   :  { %v3598_v57 = vsel %vm556_vm3, %v3597_v23, %v3596_v1  ;;  %v3584_v26 = vunpack.c.l.b16 %v3544_v50  ;;  %v3591_v56 = vunpack.c.l.b16 %v3551_v49  ;;  %v3592_v22 = vunpack.c.l.b16 %v3552_v53 }
 0x85d   :  { %v3600_v8 = vsel %vm559_vm4, %v3599_v18, %v3598_v57  ;;  %v3608_v37 = vsel %vm550_vm1, %v3607_v38, %v3585_v48  ;;  %v3611_v21 = vrot.slane %v3588_v27, 5  ;;  %v3603_v35 = vrot.slane %v3583_v52, 2 }
 0x85e   :  { %v3602_v19 = vsel %vm562_vm5, %v3601_v9, %v3600_v8  ;;  %v3610_v31 = vsel %vm553_vm2, %v3609_v43, %v3608_v37  ;;  %v3613_v25 = vrot.slane %v3589_v5, 4  ;;  %v3615_v28 = vrot.slane %v3590_v0, 3 }
 0x85f   :  { %v3612_v16 = vsel %vm556_vm3, %v3611_v21, %v3610_v31  ;;  %v3604_v54 = vsel %vm565_vm6, %v3603_v35, %v3602_v19  ;;  %v3617_v58 = vrot.slane %v3591_v56, 2  ;;  %v3605_v47 = vrot.slane %v3584_v26, 1 }
 0x860   :  { %v3614_v50 = vsel %vm559_vm4, %v3613_v25, %v3612_v16  ;;  %v3619_v46 = vrot.slane %v3592_v22, 1  ;;  %v3560_v32 = vrot.slane %v5905_v13, %v192_v14 }
 0x861   :  { %v3616_v4 = vsel %vm562_vm5, %v3615_v28, %v3614_v50  ;;  %v3606_v60 = vsel %vm568_vm7, %v3605_v47, %v3604_v54 }
 0x862   :  { %v3618_v61 = vsel %vm565_vm6, %v3617_v58, %v3616_v4 }
 0x863   :  { %v3620_v2 = vsel %vm568_vm7, %v3619_v46, %v3618_v61 }
 0x864   :  { %v3621_v29 = vpack.c.b16 %v3620_v2, %v3606_v60 }
 0x866   :  { %4269 = vmatmul.mubr.msk.bf16.vlgmr.msra.gmra.mxu0 %vm206_vm0, %v3621_v29 }
 0x867   :  { %4276 = vmatprep.mubr.msk.bf16.mxu0 %vm4599_vm8, %v4598_v15  ;;  %4273 = vmatpush3.bf16.msra.mxu0 %v4338_v6 }
 0x868   :  { %4274 = vmatprep.subr.bf16.mxu0 %v4598_v15  ;;  %v3876_v15 = vld [vmem:[%s6022_s12] ss:$0 sm:$0xff] }
 0x86b   :  { %4275 = vmatpush3.bf16.msra.mxu0 %v4339_v24 }
 0x926   :  { %v3671_v12 = vpop.f32.mrf.mxu0 }
 0x927   :  { %v3672_v45 = vadd.f32 %v3671_v12, %v3560_v32 }
 0x928   :  { %v4270_v39 = vpop.f32.mrf.mxu0 }
 0x929   :  { %4416 = vtanh.f32 %v3672_v45 }
 0x92a   :  { %v3674_v34 = vpop.f32.mrf.mxu0 }
 0x92b   :  { %v3675_v63 = vadd.f32 %v3674_v34, %v3560_v32 }
 0x92c   :  { %v4271_v11 = vpop.f32.mrf.mxu0 }
 0x92d   :  { %4418 = vtanh.f32 %v3675_v63 }
 0x936   :  { %v4417_v51 = vpop.eup %4416 }
 0x93a   :  { %v4419_v40 = vpop.eup %4418 }
 0x93b   :  { %v3680_v41 = vpack.c.bf16 %v4419_v40, %v4417_v51 }
 0x93d   :  { %4277 = vmatmul.mubr.msk.bf16.vlgmr.msra.gmra.mxu0 %vm206_vm0, %v3680_v41 }
 0x9fd   :  { %v3741_v10 = vpop.f32.mrf.mxu0 }
 0x9fe   :  { %v3742_v44 = vadd.f32 %v3876_v15, %v3741_v10 }
 0x9ff   :  { %v4278_v14 = vpop.f32.mrf.mxu0 }
 0xa00   :  { %3748 = vst [vmem:[#allocation13] sm:$0xff] %v3742_v44 }
 0xa01   :  { %v3744_v13 = vpop.f32.mrf.mxu0 }
 0xa02   :  { %v3745_v17 = vadd.f32 %v3876_v15, %v3744_v13 }
 0xa03   :  { %v4279_v55 = vpop.f32.mrf.mxu0 }
 0xa04   :  { %3749 = vst [vmem:[#allocation13 + $0x8] sm:$0xff] %v3745_v17 }
 0xa05   :  { %4569 = shalt.err (!%p4566_p6)
}
 0xa06   :  { %3761 = dma.vmem_to_hbm [thread:$0]  %s3756_s25, 256, %s6023_s13, [#allocation4], %s4596_s19, %s4596_s19, %s4597_s20  }
 0xa07   :  { %4586 = dma.done.wait [#allocation4], 256  }
 0xa08   :  { %4587 = vsyncadd [#allocation4], 4294967040 }
 0xa09   :  { %3765 = vsyncpa [#allocation3], 1 }
 0xa0a   :  { %3766 = vsyncpa [#allocation6], 1 }
 0xa0b   :  { %3767 = vsyncpa [#allocation9], 1 }
 0xa0c   :  { %3768 = vsyncpa [#allocation12], 1 }
 0xa0d   :  { %3769 = vsyncpa [#allocation4], 1 }

</bundles_post_ra>
